<compile_context>
chip_gen: v7x
topology: tpu7x:2x2x1
jax: 0.10.0
libtpu: 0.0.40
codegen_flags: <defaults>
</compile_context>

<pallas_src>
import functools
import math

import numpy as np
import jax
import jax.numpy as jnp
from jax import lax
from jax.experimental import pallas as pl
from jax.experimental.pallas import tpu as pltpu

# ---------------- configuration (small, consistent with the module) ----------
ENCODER_DIM = 32          # d_model
NUM_HEADS = 4
FF_EXPANSION = 4
CONV_KERNEL = 7           # conv_kernel_size ((K-1) % 2 == 0)
HALF_STEP_RESIDUAL = False
FF_RES_FACTOR = 0.5 if HALF_STEP_RESIDUAL else 1.0
LN_EPS = 1e-5
BN_EPS = 1e-5
BATCH = 2
SEQ = 8


# ---------------- constants ----------------------------------------------------
def _rel_positional_encoding(T, D):
    """espnet-style RelPositionalEncoding -> (2T-1, D), built with numpy."""
    pos = np.arange(T, dtype=np.float32)[:, None]
    div = np.exp(np.arange(0, D, 2, dtype=np.float32) * -(math.log(10000.0) / D))
    pe_pos = np.zeros((T, D), np.float32)
    pe_pos[:, 0::2] = np.sin(pos * div)
    pe_pos[:, 1::2] = np.cos(pos * div)
    pe_neg = np.zeros((T, D), np.float32)
    pe_neg[:, 0::2] = np.sin(-pos * div)
    pe_neg[:, 1::2] = np.cos(-pos * div)
    pe = np.concatenate([pe_pos[::-1], pe_neg[1:]], axis=0)   # (2T-1, D)
    return jnp.asarray(pe)


# ---------------- small helpers -------------------------------------------------
def _layer_norm(x, g, b):
    mean = jnp.mean(x, axis=-1, keepdims=True)
    xc = x - mean
    var = jnp.mean(xc * xc, axis=-1, keepdims=True)
    return xc * lax.rsqrt(var + LN_EPS) * g + b


def _swish(x):
    return x * jax.nn.sigmoid(x)


# ---------------- the fused SqueezeformerBlock kernel ---------------------------
def _block_kernel(x_ref, vec_ref, win_ref, wout_ref, o_ref, *,
                  num_heads, conv_kernel, ff_res_factor,
                  vrows, win_cols, wout_rows):
    f32 = jnp.float32
    Bb, T, D = x_ref.shape
    H = num_heads
    dh = D // H
    K = conv_kernel
    kpad = (K - 1) // 2
    N = Bb * T
    HT = H * T
    Dff = win_cols['ff1_w1'][1]
    scale = 1.0 / math.sqrt(dh)

    # ---- packed-parameter accessors (static slices of the three slab refs) ----
    def vec(name, width=D):
        r = vrows[name]
        return vec_ref[r:r + 1, :width]

    def win(name):
        c0, w = win_cols[name]
        return win_ref[:, c0:c0 + w]

    def wout(name):
        r0, r = wout_rows[name]
        return wout_ref[r0:r0 + r, :]

    x = x_ref[...].reshape(N, D)                                    # (Bb*T, D)

    # ---------------- MHSA (relative positional) + residual --------------------
    qkv = jnp.dot(x, win('wqkv'), preferred_element_type=f32) + vec('bqkv', 3 * D)
    posp = wout('posp')                     # (2T-1, D), pos_proj applied in wrapper
    u_stack = wout('u_stack')               # (H*T, D) per-head masked u bias
    v_stack = wout('v_stack')               # (H*T, D) per-head masked v bias
    masks = [vec('mask%d' % h) for h in range(H)]                   # (1, D) 0/1

    trow = lax.broadcasted_iota(jnp.int32, (HT, T), 0)
    trow = (trow & (T - 1)) if (T & (T - 1)) == 0 else lax.rem(trow, T)
    dn_t = (((1,), (1,)), ((), ()))         # contract last dims: A @ B.T

    ctx_list = []
    for b in range(Bb):
        r0, r1 = b * T, (b + 1) * T
        qb = qkv[r0:r1, 0:D]
        kb = qkv[r0:r1, D:2 * D]
        vb = qkv[r0:r1, 2 * D:3 * D]

        # head-stacked masked queries: row h*T+t = q[t] restricted to head h cols
        mq = jnp.concatenate([qb * masks[h] for h in range(H)], axis=0)   # (HT, D)
        lhs = jnp.concatenate([mq + u_stack, mq + v_stack], axis=0)       # (2HT, D)
        rhs = jnp.concatenate([kb, posp], axis=0)                         # (3T-1, D)
        res = lax.dot_general(lhs, rhs, dn_t, preferred_element_type=f32)  # (2HT, 3T-1)
        content = res[:HT, :T]                                             # (HT, T)
        pos_raw = res[HT:, T:]                                             # (HT, 2T-1)

        # relative shift: shifted[h*T+t, j] = pos_raw[h*T+t, T-1-t+j]
        shifted = jnp.zeros((HT, T), f32)
        for t in range(T):
            shifted = jnp.where(trow == t,
                                pos_raw[:, T - 1 - t:2 * T - 1 - t], shifted)

        score = (content + shifted) * scale
        score = score - jnp.max(score, axis=-1, keepdims=True)
        e = jnp.exp(score)
        attn = e * pl.reciprocal(jnp.sum(e, axis=-1, keepdims=True), approx=True)
        # TODO(synk): attention dropout omitted (inference / identity)

        ctx_full = jnp.dot(attn, vb, preferred_element_type=f32)           # (HT, D)
        ctx = masks[0] * ctx_full[0:T, :]
        for h in range(1, H):
            ctx = ctx + masks[h] * ctx_full[h * T:(h + 1) * T, :]
        ctx_list.append(ctx)

    context = ctx_list[0] if Bb == 1 else jnp.concatenate(ctx_list, axis=0)  # (N, D)
    x = x + jnp.dot(context, win('wo'), preferred_element_type=f32) + vec('bo')
    x = _layer_norm(x, vec('ln1_g'), vec('ln1_b'))

    # ---------------- FeedForward 1 + residual ----------------------------------
    h1 = _swish(jnp.dot(x, win('ff1_w1'), preferred_element_type=f32)
                + vec('ff1_b1', Dff))
    x = x + ff_res_factor * (jnp.dot(h1, wout('ff1_w2'),
                                     preferred_element_type=f32) + vec('ff1_b2'))
    x = _layer_norm(x, vec('ln2_g'), vec('ln2_b'))

    # ---------------- Conv module + residual ------------------------------------
    pw = jnp.dot(x, win('glu_w'), preferred_element_type=f32) + vec('glu_b', 2 * D)
    hc = pw[:, 0:D] * jax.nn.sigmoid(pw[:, D:2 * D])                # GLU, (N, D)

    # depthwise conv over time: register-resident zero-pad + K shifted slices
    wdw = wout('conv_wdw')                                          # (K, D)
    zpad = jnp.zeros((kpad, D), f32)
    conv_list = []
    for b in range(Bb):
        hp = jnp.concatenate([zpad, hc[b * T:(b + 1) * T, :], zpad], axis=0)
        acc = hp[0:T, :] * wdw[0:1, :]
        for kk in range(1, K):
            acc = acc + hp[kk:kk + T, :] * wdw[kk:kk + 1, :]
        conv_list.append(acc)
    cv = conv_list[0] if Bb == 1 else jnp.concatenate(conv_list, axis=0)
    cv = cv + vec('conv_bdw')
    cv = cv * vec('bn_scale') + vec('bn_shift')   # BatchNorm1d folded (eval stats)
    cv = _swish(cv)
    # TODO(synk): BatchNorm1d train-mode batch statistics not reproduced (eval only)
    x = x + jnp.dot(cv, win('conv_wp2'), preferred_element_type=f32) + vec('conv_bp2')
    x = _layer_norm(x, vec('ln3_g'), vec('ln3_b'))

    # ---------------- FeedForward 2 + residual ----------------------------------
    h2 = _swish(jnp.dot(x, win('ff2_w1'), preferred_element_type=f32)
                + vec('ff2_b1', Dff))
    x = x + ff_res_factor * (jnp.dot(h2, wout('ff2_w2'),
                                     preferred_element_type=f32) + vec('ff2_b2'))
    x = _layer_norm(x, vec('ln4_g'), vec('ln4_b'))

    # NOTE: a lane-dense (Bb, T*D) store would need an in-kernel sublane->lane
    # relayout that costs more than the 2 KB of masked stores it would save.
    o_ref[...] = x.reshape(Bb, T, D).astype(o_ref.dtype)


# ---------------- wrapper --------------------------------------------------------
def _use_batch_grid(B):
    """Shard the batch over TensorCores only on v7x (2 TCs/chip); on v5e/v6e the
    grid is a serial loop, so folding the batch into one step is faster."""
    if B < 2:
        return False
    try:
        kind = jax.devices()[0].device_kind.lower()
    except Exception:
        return False
    return ("v7" in kind) or ("7x" in kind)


def squeezeformer_block(x, p):
    B, T, D = x.shape
    H = NUM_HEADS
    dh = D // H
    K = CONV_KERNEL
    Dff = p['ff1_w1'].shape[1]

    # ---- parameter-only folding, hoisted out of the kernel (tiny XLA ops) ------
    posp = jnp.dot(_rel_positional_encoding(T, D), p['wpos'])       # (2T-1, D)
    wqkv = jnp.concatenate([p['wq'], p['wk'], p['wv']], axis=1)     # (D, 3D)
    bqkv = jnp.concatenate([p['bq'], p['bk'], p['bv']], axis=0)     # (3D,)
    glu_w = jnp.concatenate([p['conv_wa'], p['conv_wg']], axis=1)   # (D, 2D)
    glu_b = jnp.concatenate([p['conv_ba'], p['conv_bg']], axis=0)   # (2D,)
    bn_scale = p['bn_gamma'] * lax.rsqrt(p['bn_var'] + BN_EPS)
    bn_shift = p['bn_beta'] - p['bn_mean'] * bn_scale

    def bias_stack(bias):   # (H, dh) -> (H*T, D): per-head masked, tiled over T rows
        full = (bias[:, None, :] * jnp.eye(H, dtype=bias.dtype)[:, :, None]).reshape(H, D)
        return jnp.repeat(full, T, axis=0)
    u_stack = bias_stack(p['u_bias'])
    v_stack = bias_stack(p['v_bias'])

    head_mask = np.zeros((H, D), np.float32)
    for h in range(H):
        head_mask[h, h * dh:(h + 1) * dh] = 1.0

    # ---- pack every small parameter into three DMA-friendly slabs --------------
    vec_arrays = {
        'bqkv': bqkv, 'bo': p['bo'],
        'ln1_g': p['ln1_g'], 'ln1_b': p['ln1_b'],
        'ff1_b1': p['ff1_b1'], 'ff1_b2': p['ff1_b2'],
        'ln2_g': p['ln2_g'], 'ln2_b': p['ln2_b'],
        'glu_b': glu_b, 'conv_bdw': p['conv_bdw'],
        'bn_scale': bn_scale, 'bn_shift': bn_shift, 'conv_bp2': p['conv_bp2'],
        'ln3_g': p['ln3_g'], 'ln3_b': p['ln3_b'],
        'ff2_b1': p['ff2_b1'], 'ff2_b2': p['ff2_b2'],
        'ln4_g': p['ln4_g'], 'ln4_b': p['ln4_b'],
    }
    for h in range(H):
        vec_arrays['mask%d' % h] = jnp.asarray(head_mask[h])

    vec_w = ((max(int(a.size) for a in vec_arrays.values()) + 127) // 128) * 128
    vrows, rows = {}, []
    for i, (name, a) in enumerate(vec_arrays.items()):
        vrows[name] = i
        a = jnp.asarray(a, jnp.float32).reshape(1, -1)
        rows.append(jnp.pad(a, ((0, 0), (0, vec_w - a.shape[1]))))
    vec_pack = jnp.concatenate(rows, axis=0)
    rpad = (-vec_pack.shape[0]) % 8
    if rpad:
        vec_pack = jnp.pad(vec_pack, ((0, rpad), (0, 0)))

    win_arrays = {'wqkv': wqkv, 'glu_w': glu_w, 'wo': p['wo'], 'conv_wp2': p['conv_wp2'],
                  'ff1_w1': p['ff1_w1'], 'ff2_w1': p['ff2_w1']}
    win_cols, cols, c0 = {}, [], 0
    for name, a in win_arrays.items():
        a = jnp.asarray(a, jnp.float32)
        w = a.shape[1]
        win_cols[name] = (c0, w)
        cpad = (-w) % 128                      # keep every segment lane-aligned
        cols.append(jnp.pad(a, ((0, 0), (0, cpad))))
        c0 += w + cpad
    w_in = jnp.concatenate(cols, axis=1)       # (D, 768)

    wout_arrays = {'ff1_w2': p['ff1_w2'], 'ff2_w2': p['ff2_w2'],
                   'conv_wdw': p['conv_wdw'], 'posp': posp,
                   'u_stack': u_stack, 'v_stack': v_stack}
    wout_rows, segs, r0 = {}, [], 0
    for name, a in wout_arrays.items():
        a = jnp.asarray(a, jnp.float32)
        r = a.shape[0]
        wout_rows[name] = (r0, r)
        spad = (-r) % 8                        # keep every segment sublane-aligned
        segs.append(jnp.pad(a, ((0, spad), (0, 0))))
        r0 += r + spad
    w_out = jnp.concatenate(segs, axis=0)      # (344, D)

    # ---- grid: fold batch on single-TC parts, shard it across cores on v7x ----
    steps = B if _use_batch_grid(B) else 1
    bb = B // steps

    kernel = functools.partial(
        _block_kernel, num_heads=H, conv_kernel=K, ff_res_factor=FF_RES_FACTOR,
        vrows=vrows, win_cols=win_cols, wout_rows=wout_rows)

    flops = (B * T * (14 * D * D + 8 * D * Dff)
             + B * (4 * H * T * (3 * T - 1) * D + 2 * H * T * T * D))
    cost = pl.CostEstimate(
        flops=int(flops),
        transcendentals=int(B * (H * T * T + 2 * T * Dff + 3 * T * D)),
        bytes_accessed=int(4 * (2 * x.size + vec_pack.size + w_in.size + w_out.size)),
    )

    in_specs = [
        pl.BlockSpec((bb, T, D), lambda i: (i, 0, 0)),
        pl.BlockSpec(vec_pack.shape, lambda i: (0, 0)),
        pl.BlockSpec(w_in.shape, lambda i: (0, 0)),
        pl.BlockSpec(w_out.shape, lambda i: (0, 0)),
    ]

    return pl.pallas_call(
        kernel,
        out_shape=jax.ShapeDtypeStruct((B, T, D), x.dtype),
        grid=(steps,),
        in_specs=in_specs,
        out_specs=pl.BlockSpec((bb, T, D), lambda i: (i, 0, 0)),
        compiler_params=pltpu.CompilerParams(dimension_semantics=("parallel",)),
        cost_estimate=cost,
    )(x, vec_pack, w_in, w_out)


# ---------------- pure-JAX reference (mirrors the PyTorch module, eval mode) ----
def _reference_block(x, p):
    B, T, D = x.shape
    H, dh, K = NUM_HEADS, D // NUM_HEADS, CONV_KERNEL
    pos = _rel_positional_encoding(T, D)

    q = x @ p['wq'] + p['bq']
    k = x @ p['wk'] + p['bk']
    v = x @ p['wv'] + p['bv']
    pe = pos @ p['wpos']                                            # (2T-1, D)
    qh = q.reshape(B, T, H, dh)
    kh = k.reshape(B, T, H, dh)
    vh = v.reshape(B, T, H, dh)
    ph = pe.reshape(2 * T - 1, H, dh)
    content = jnp.einsum('bthd,bshd->bhts', qh + p['u_bias'], kh)
    pos_sc = jnp.einsum('bthd,mhd->bhtm', qh + p['v_bias'], ph)     # (B,H,T,2T-1)
    # PyTorch _relative_shift (pad + reshape + truncate)
    Bq, Hh, T1, T2 = pos_sc.shape
    padded = jnp.concatenate([jnp.zeros((Bq, Hh, T1, 1), pos_sc.dtype), pos_sc], axis=-1)
    padded = padded.reshape(Bq, Hh, T2 + 1, T1)
    pos_sc = padded[:, :, 1:].reshape(Bq, Hh, T1, T2)[:, :, :, :T2 // 2 + 1]
    score = (content + pos_sc) / math.sqrt(dh)
    attn = jax.nn.softmax(score, axis=-1)
    ctx = jnp.einsum('bhts,bshd->bthd', attn, vh).reshape(B, T, D)
    x = _layer_norm(x + ctx @ p['wo'] + p['bo'], p['ln1_g'], p['ln1_b'])

    h1 = jax.nn.silu(x @ p['ff1_w1'] + p['ff1_b1'])
    x = _layer_norm(x + FF_RES_FACTOR * (h1 @ p['ff1_w2'] + p['ff1_b2']),
                    p['ln2_g'], p['ln2_b'])

    a = x @ p['conv_wa'] + p['conv_ba']
    g = x @ p['conv_wg'] + p['conv_bg']
    hc = a * jax.nn.sigmoid(g)
    padc = (K - 1) // 2
    hp = jnp.pad(hc, ((0, 0), (padc, padc), (0, 0)))
    cv = sum(hp[:, kk:kk + T, :] * p['conv_wdw'][kk] for kk in range(K)) + p['conv_bdw']
    bs = p['bn_gamma'] * lax.rsqrt(p['bn_var'] + BN_EPS)
    cv = cv * bs + (p['bn_beta'] - p['bn_mean'] * bs)
    cv = jax.nn.silu(cv)
    x = _layer_norm(x + cv @ p['conv_wp2'] + p['conv_bp2'], p['ln3_g'], p['ln3_b'])

    h2 = jax.nn.silu(x @ p['ff2_w1'] + p['ff2_b1'])
    x = _layer_norm(x + FF_RES_FACTOR * (h2 @ p['ff2_w2'] + p['ff2_b2']),
                    p['ln4_g'], p['ln4_b'])
    return x


# ---------------- deterministic parameter init ----------------------------------
def init_params(key):
    D = ENCODER_DIM
    H = NUM_HEADS
    dh = D // H
    Dff = D * FF_EXPANSION
    K = CONV_KERNEL
    ks = jax.random.split(key, 32)

    def w(i, shape, scale=0.05):
        return (scale * jax.random.normal(ks[i], shape)).astype(jnp.float32)

    ones = lambda n: jnp.ones((n,), jnp.float32)
    zeros = lambda n: jnp.zeros((n,), jnp.float32)
    p = {
        'wq': w(0, (D, D)), 'bq': w(1, (D,), 0.02),
        'wk': w(2, (D, D)), 'bk': w(3, (D,), 0.02),
        'wv': w(4, (D, D)), 'bv': w(5, (D,), 0.02),
        'wpos': w(6, (D, D)),
        'u_bias': w(7, (H, dh)), 'v_bias': w(8, (H, dh)),
        'wo': w(9, (D, D)), 'bo': w(10, (D,), 0.02),
        'ln1_g': ones(D), 'ln1_b': zeros(D),
        'ff1_w1': w(11, (D, Dff)), 'ff1_b1': w(12, (Dff,), 0.02),
        'ff1_w2': w(13, (Dff, D)), 'ff1_b2': w(14, (D,), 0.02),
        'ln2_g': ones(D), 'ln2_b': zeros(D),
        'conv_wa': w(15, (D, D)), 'conv_ba': w(16, (D,), 0.02),
        'conv_wg': w(17, (D, D)), 'conv_bg': w(18, (D,), 0.02),
        'conv_wdw': w(19, (K, D)), 'conv_bdw': w(20, (D,), 0.02),
        'bn_gamma': ones(D), 'bn_beta': zeros(D),
        'bn_mean': zeros(D), 'bn_var': ones(D),
        'conv_wp2': w(21, (D, D)), 'conv_bp2': w(22, (D,), 0.02),
        'ln3_g': ones(D), 'ln3_b': zeros(D),
        'ff2_w1': w(23, (D, Dff)), 'ff2_b1': w(24, (Dff,), 0.02),
        'ff2_w2': w(25, (Dff, D)), 'ff2_b2': w(26, (D,), 0.02),
        'ln4_g': ones(D), 'ln4_b': zeros(D),
    }
    return p


if __name__ == "__main__":
    key = jax.random.PRNGKey(0)
    pkey, xkey = jax.random.split(key)
    params = init_params(pkey)
    x = jax.random.normal(xkey, (BATCH, SEQ, ENCODER_DIM), dtype=jnp.float32)

    out = jax.block_until_ready(jax.jit(squeezeformer_block)(x, params))
    assert out.shape == (BATCH, SEQ, ENCODER_DIM), out.shape
    assert bool(jnp.all(jnp.isfinite(out)))

    with jax.default_matmul_precision("highest"):
        ref = jax.block_until_ready(jax.jit(_reference_block)(x, params))
    # loose tolerance absorbs the approx-EUP reciprocal used in the softmax
    np.testing.assert_allclose(np.asarray(out), np.asarray(ref), rtol=2e-2, atol=2e-2)

    print("KERNEL_OK")
</pallas_src>

<mosaic_0001>
module attributes {stable_mosaic.version = 11 : i64} {
  func.func @_block_kernel(%arg0: i32, %arg1: memref<2x8x32xf32, #tpu.memory_space<vmem>>, %arg2: memref<24x128xf32, #tpu.memory_space<vmem>>, %arg3: memref<32x768xf32, #tpu.memory_space<vmem>>, %arg4: memref<344x32xf32, #tpu.memory_space<vmem>>, %arg5: memref<2x8x32xf32, #tpu.memory_space<vmem>>) attributes {dimension_semantics = [#tpu.dimension_semantics<parallel>], iteration_bounds = array<i64: 1>, scalar_prefetch = 0 : i64, scratch_operands = 0 : i64, tpu.core_type = #tpu.core_type<tc>, window_params = [{transform_indices = @transform_0, window_bounds = array<i64: 2, 8, 32>}, {pipeline_mode = #tpu.pipeline_mode<synchronous>, transform_indices = @transform_1, window_bounds = array<i64: 24, 128>}, {pipeline_mode = #tpu.pipeline_mode<synchronous>, transform_indices = @transform_2, window_bounds = array<i64: 32, 768>}, {pipeline_mode = #tpu.pipeline_mode<synchronous>, transform_indices = @transform_3, window_bounds = array<i64: 344, 32>}, {transform_indices = @transform_4, window_bounds = array<i64: 2, 8, 32>}]} {
    %c0 = arith.constant 0 : index
    %c0_0 = arith.constant 0 : index
    %c0_1 = arith.constant 0 : index
    %0 = vector.load %arg1[%c0, %c0_0, %c0_1] : memref<2x8x32xf32, #tpu.memory_space<vmem>>, vector<2x8x32xf32>
    %1 = vector.shape_cast %0 : vector<2x8x32xf32> to vector<16x32xf32>
    %c0_2 = arith.constant 0 : index
    %c0_3 = arith.constant 0 : index
    %2 = vector.load %arg3[%c0_2, %c0_3] : memref<32x768xf32, #tpu.memory_space<vmem>>, vector<32x96xf32>
    %cst = arith.constant dense<0.000000e+00> : vector<16x96xf32>
    %3 = tpu.matmul %1, %2, %cst {dimension_numbers = #tpu.dot_dimension_numbers<[1], [0], [0], [1], [0, 0, 1, 1], [], []>} : vector<16x32xf32>, vector<32x96xf32>, vector<16x96xf32> -> vector<16x96xf32>
    %c0_4 = arith.constant 0 : index
    %c0_5 = arith.constant 0 : index
    %4 = vector.load %arg2[%c0_4, %c0_5] : memref<24x128xf32, #tpu.memory_space<vmem>>, vector<1x96xf32>
    %5 = vector.broadcast %4 : vector<1x96xf32> to vector<16x96xf32>
    %6 = arith.addf %3, %5 : vector<16x96xf32>
    %c264 = arith.constant 264 : index
    %c0_6 = arith.constant 0 : index
    %7 = vector.load %arg4[%c264, %c0_6] : memref<344x32xf32, #tpu.memory_space<vmem>>, vector<15x32xf32>
    %c280 = arith.constant 280 : index
    %c0_7 = arith.constant 0 : index
    %8 = vector.load %arg4[%c280, %c0_7] : memref<344x32xf32, #tpu.memory_space<vmem>>, vector<32x32xf32>
    %c312 = arith.constant 312 : index
    %c0_8 = arith.constant 0 : index
    %9 = vector.load %arg4[%c312, %c0_8] : memref<344x32xf32, #tpu.memory_space<vmem>>, vector<32x32xf32>
    %c19 = arith.constant 19 : index
    %c0_9 = arith.constant 0 : index
    %10 = vector.load %arg2[%c19, %c0_9] : memref<24x128xf32, #tpu.memory_space<vmem>>, vector<1x32xf32>
    %c20 = arith.constant 20 : index
    %c0_10 = arith.constant 0 : index
    %11 = vector.load %arg2[%c20, %c0_10] : memref<24x128xf32, #tpu.memory_space<vmem>>, vector<1x32xf32>
    %c21 = arith.constant 21 : index
    %c0_11 = arith.constant 0 : index
    %12 = vector.load %arg2[%c21, %c0_11] : memref<24x128xf32, #tpu.memory_space<vmem>>, vector<1x32xf32>
    %c22 = arith.constant 22 : index
    %c0_12 = arith.constant 0 : index
    %13 = vector.load %arg2[%c22, %c0_12] : memref<24x128xf32, #tpu.memory_space<vmem>>, vector<1x32xf32>
    %14 = tpu.iota {dimensions = array<i32: 0>} : vector<32x8xi32>
    %c7_i32 = arith.constant 7 : i32
    %15 = vector.broadcast %c7_i32 : i32 to vector<32x8xi32>
    %16 = arith.andi %14, %15 : vector<32x8xi32>
    %17 = vector.extract_strided_slice %6 {offsets = [0, 0], sizes = [8, 32], strides = [1, 1]} : vector<16x96xf32> to vector<8x32xf32>
    %18 = vector.extract_strided_slice %6 {offsets = [0, 32], sizes = [8, 32], strides = [1, 1]} : vector<16x96xf32> to vector<8x32xf32>
    %19 = vector.extract_strided_slice %6 {offsets = [0, 64], sizes = [8, 32], strides = [1, 1]} : vector<16x96xf32> to vector<8x32xf32>
    %20 = vector.broadcast %10 : vector<1x32xf32> to vector<8x32xf32>
    %21 = arith.mulf %17, %20 : vector<8x32xf32>
    %22 = vector.broadcast %11 : vector<1x32xf32> to vector<8x32xf32>
    %23 = arith.mulf %17, %22 : vector<8x32xf32>
    %24 = vector.broadcast %12 : vector<1x32xf32> to vector<8x32xf32>
    %25 = arith.mulf %17, %24 : vector<8x32xf32>
    %26 = vector.broadcast %13 : vector<1x32xf32> to vector<8x32xf32>
    %27 = arith.mulf %17, %26 : vector<8x32xf32>
    %28 = tpu.concatenate %21, %23, %25, %27 in 0 : vector<8x32xf32>, vector<8x32xf32>, vector<8x32xf32>, vector<8x32xf32> -> vector<32x32xf32>
    %29 = arith.addf %28, %8 : vector<32x32xf32>
    %30 = arith.addf %28, %9 : vector<32x32xf32>
    %31 = tpu.concatenate %29, %30 in 0 : vector<32x32xf32>, vector<32x32xf32> -> vector<64x32xf32>
    %32 = tpu.concatenate %18, %7 in 0 : vector<8x32xf32>, vector<15x32xf32> -> vector<23x32xf32>
    %cst_13 = arith.constant dense<0.000000e+00> : vector<64x23xf32>
    %33 = tpu.matmul %31, %32, %cst_13 {dimension_numbers = #tpu.dot_dimension_numbers<[1], [1], [0], [0], [0, 0, 1, 0], [], []>} : vector<64x32xf32>, vector<23x32xf32>, vector<64x23xf32> -> vector<64x23xf32>
    %34 = vector.extract_strided_slice %33 {offsets = [0, 0], sizes = [32, 8], strides = [1, 1]} : vector<64x23xf32> to vector<32x8xf32>
    %35 = vector.extract_strided_slice %33 {offsets = [32, 8], sizes = [32, 15], strides = [1, 1]} : vector<64x23xf32> to vector<32x15xf32>
    %cst_14 = arith.constant 0.000000e+00 : f32
    %36 = vector.broadcast %cst_14 : f32 to vector<32x8xf32>
    %c0_i32 = arith.constant 0 : i32
    %37 = vector.broadcast %c0_i32 : i32 to vector<32x8xi32>
    %38 = arith.cmpi eq, %16, %37 : vector<32x8xi32>
    %39 = vector.extract_strided_slice %35 {offsets = [0, 7], sizes = [32, 8], strides = [1, 1]} : vector<32x15xf32> to vector<32x8xf32>
    %40 = arith.select %38, %39, %36 : vector<32x8xi1>, vector<32x8xf32>
    %c1_i32 = arith.constant 1 : i32
    %41 = vector.broadcast %c1_i32 : i32 to vector<32x8xi32>
    %42 = arith.cmpi eq, %16, %41 : vector<32x8xi32>
    %43 = vector.extract_strided_slice %35 {offsets = [0, 6], sizes = [32, 8], strides = [1, 1]} : vector<32x15xf32> to vector<32x8xf32>
    %44 = arith.select %42, %43, %40 : vector<32x8xi1>, vector<32x8xf32>
    %c2_i32 = arith.constant 2 : i32
    %45 = vector.broadcast %c2_i32 : i32 to vector<32x8xi32>
    %46 = arith.cmpi eq, %16, %45 : vector<32x8xi32>
    %47 = vector.extract_strided_slice %35 {offsets = [0, 5], sizes = [32, 8], strides = [1, 1]} : vector<32x15xf32> to vector<32x8xf32>
    %48 = arith.select %46, %47, %44 : vector<32x8xi1>, vector<32x8xf32>
    %c3_i32 = arith.constant 3 : i32
    %49 = vector.broadcast %c3_i32 : i32 to vector<32x8xi32>
    %50 = arith.cmpi eq, %16, %49 : vector<32x8xi32>
    %51 = vector.extract_strided_slice %35 {offsets = [0, 4], sizes = [32, 8], strides = [1, 1]} : vector<32x15xf32> to vector<32x8xf32>
    %52 = arith.select %50, %51, %48 : vector<32x8xi1>, vector<32x8xf32>
    %c4_i32 = arith.constant 4 : i32
    %53 = vector.broadcast %c4_i32 : i32 to vector<32x8xi32>
    %54 = arith.cmpi eq, %16, %53 : vector<32x8xi32>
    %55 = vector.extract_strided_slice %35 {offsets = [0, 3], sizes = [32, 8], strides = [1, 1]} : vector<32x15xf32> to vector<32x8xf32>
    %56 = arith.select %54, %55, %52 : vector<32x8xi1>, vector<32x8xf32>
    %c5_i32 = arith.constant 5 : i32
    %57 = vector.broadcast %c5_i32 : i32 to vector<32x8xi32>
    %58 = arith.cmpi eq, %16, %57 : vector<32x8xi32>
    %59 = vector.extract_strided_slice %35 {offsets = [0, 2], sizes = [32, 8], strides = [1, 1]} : vector<32x15xf32> to vector<32x8xf32>
    %60 = arith.select %58, %59, %56 : vector<32x8xi1>, vector<32x8xf32>
    %c6_i32 = arith.constant 6 : i32
    %61 = vector.broadcast %c6_i32 : i32 to vector<32x8xi32>
    %62 = arith.cmpi eq, %16, %61 : vector<32x8xi32>
    %63 = vector.extract_strided_slice %35 {offsets = [0, 1], sizes = [32, 8], strides = [1, 1]} : vector<32x15xf32> to vector<32x8xf32>
    %64 = arith.select %62, %63, %60 : vector<32x8xi1>, vector<32x8xf32>
    %c7_i32_15 = arith.constant 7 : i32
    %65 = vector.broadcast %c7_i32_15 : i32 to vector<32x8xi32>
    %66 = arith.cmpi eq, %16, %65 : vector<32x8xi32>
    %67 = vector.extract_strided_slice %35 {offsets = [0, 0], sizes = [32, 8], strides = [1, 1]} : vector<32x15xf32> to vector<32x8xf32>
    %68 = arith.select %66, %67, %64 : vector<32x8xi1>, vector<32x8xf32>
    %69 = arith.addf %34, %68 : vector<32x8xf32>
    %cst_16 = arith.constant 0.353553385 : f32
    %70 = vector.broadcast %cst_16 : f32 to vector<32x8xf32>
    %71 = arith.mulf %69, %70 : vector<32x8xf32>
    %cst_17 = arith.constant dense<0xFF800000> : vector<32xf32>
    %72 = vector.multi_reduction <maximumf>, %71, %cst_17 [1] : vector<32x8xf32> to vector<32xf32>
    %73 = vector.shape_cast %72 : vector<32xf32> to vector<32x1xf32>
    %74 = vector.broadcast %73 : vector<32x1xf32> to vector<32x8xf32>
    %75 = arith.subf %71, %74 : vector<32x8xf32>
    %76 = math.exp %75 : vector<32x8xf32>
    %cst_18 = arith.constant dense<0.000000e+00> : vector<32xf32>
    %77 = vector.multi_reduction <add>, %76, %cst_18 [1] : vector<32x8xf32> to vector<32xf32>
    %78 = vector.shape_cast %77 : vector<32xf32> to vector<32x1xf32>
    %79 = tpu.reciprocal %78 {approx = true} : vector<32x1xf32> -> vector<32x1xf32>
    %80 = vector.broadcast %79 : vector<32x1xf32> to vector<32x8xf32>
    %81 = arith.mulf %76, %80 : vector<32x8xf32>
    %cst_19 = arith.constant dense<0.000000e+00> : vector<32x32xf32>
    %82 = tpu.matmul %81, %19, %cst_19 {dimension_numbers = #tpu.dot_dimension_numbers<[1], [0], [0], [1], [0, 0, 1, 1], [], []>} : vector<32x8xf32>, vector<8x32xf32>, vector<32x32xf32> -> vector<32x32xf32>
    %83 = vector.extract_strided_slice %82 {offsets = [0, 0], sizes = [8, 32], strides = [1, 1]} : vector<32x32xf32> to vector<8x32xf32>
    %84 = vector.broadcast %10 : vector<1x32xf32> to vector<8x32xf32>
    %85 = arith.mulf %84, %83 : vector<8x32xf32>
    %86 = vector.extract_strided_slice %82 {offsets = [8, 0], sizes = [8, 32], strides = [1, 1]} : vector<32x32xf32> to vector<8x32xf32>
    %87 = vector.broadcast %11 : vector<1x32xf32> to vector<8x32xf32>
    %88 = arith.mulf %87, %86 : vector<8x32xf32>
    %89 = arith.addf %85, %88 : vector<8x32xf32>
    %90 = vector.extract_strided_slice %82 {offsets = [16, 0], sizes = [8, 32], strides = [1, 1]} : vector<32x32xf32> to vector<8x32xf32>
    %91 = vector.broadcast %12 : vector<1x32xf32> to vector<8x32xf32>
    %92 = arith.mulf %91, %90 : vector<8x32xf32>
    %93 = arith.addf %89, %92 : vector<8x32xf32>
    %94 = vector.extract_strided_slice %82 {offsets = [24, 0], sizes = [8, 32], strides = [1, 1]} : vector<32x32xf32> to vector<8x32xf32>
    %95 = vector.broadcast %13 : vector<1x32xf32> to vector<8x32xf32>
    %96 = arith.mulf %95, %94 : vector<8x32xf32>
    %97 = arith.addf %93, %96 : vector<8x32xf32>
    %98 = vector.extract_strided_slice %6 {offsets = [8, 0], sizes = [8, 32], strides = [1, 1]} : vector<16x96xf32> to vector<8x32xf32>
    %99 = vector.extract_strided_slice %6 {offsets = [8, 32], sizes = [8, 32], strides = [1, 1]} : vector<16x96xf32> to vector<8x32xf32>
    %100 = vector.extract_strided_slice %6 {offsets = [8, 64], sizes = [8, 32], strides = [1, 1]} : vector<16x96xf32> to vector<8x32xf32>
    %101 = vector.broadcast %10 : vector<1x32xf32> to vector<8x32xf32>
    %102 = arith.mulf %98, %101 : vector<8x32xf32>
    %103 = vector.broadcast %11 : vector<1x32xf32> to vector<8x32xf32>
    %104 = arith.mulf %98, %103 : vector<8x32xf32>
    %105 = vector.broadcast %12 : vector<1x32xf32> to vector<8x32xf32>
    %106 = arith.mulf %98, %105 : vector<8x32xf32>
    %107 = vector.broadcast %13 : vector<1x32xf32> to vector<8x32xf32>
    %108 = arith.mulf %98, %107 : vector<8x32xf32>
    %109 = tpu.concatenate %102, %104, %106, %108 in 0 : vector<8x32xf32>, vector<8x32xf32>, vector<8x32xf32>, vector<8x32xf32> -> vector<32x32xf32>
    %110 = arith.addf %109, %8 : vector<32x32xf32>
    %111 = arith.addf %109, %9 : vector<32x32xf32>
    %112 = tpu.concatenate %110, %111 in 0 : vector<32x32xf32>, vector<32x32xf32> -> vector<64x32xf32>
    %113 = tpu.concatenate %99, %7 in 0 : vector<8x32xf32>, vector<15x32xf32> -> vector<23x32xf32>
    %cst_20 = arith.constant dense<0.000000e+00> : vector<64x23xf32>
    %114 = tpu.matmul %112, %113, %cst_20 {dimension_numbers = #tpu.dot_dimension_numbers<[1], [1], [0], [0], [0, 0, 1, 0], [], []>} : vector<64x32xf32>, vector<23x32xf32>, vector<64x23xf32> -> vector<64x23xf32>
    %115 = vector.extract_strided_slice %114 {offsets = [0, 0], sizes = [32, 8], strides = [1, 1]} : vector<64x23xf32> to vector<32x8xf32>
    %116 = vector.extract_strided_slice %114 {offsets = [32, 8], sizes = [32, 15], strides = [1, 1]} : vector<64x23xf32> to vector<32x15xf32>
    %cst_21 = arith.constant 0.000000e+00 : f32
    %117 = vector.broadcast %cst_21 : f32 to vector<32x8xf32>
    %c0_i32_22 = arith.constant 0 : i32
    %118 = vector.broadcast %c0_i32_22 : i32 to vector<32x8xi32>
    %119 = arith.cmpi eq, %16, %118 : vector<32x8xi32>
    %120 = vector.extract_strided_slice %116 {offsets = [0, 7], sizes = [32, 8], strides = [1, 1]} : vector<32x15xf32> to vector<32x8xf32>
    %121 = arith.select %119, %120, %117 : vector<32x8xi1>, vector<32x8xf32>
    %c1_i32_23 = arith.constant 1 : i32
    %122 = vector.broadcast %c1_i32_23 : i32 to vector<32x8xi32>
    %123 = arith.cmpi eq, %16, %122 : vector<32x8xi32>
    %124 = vector.extract_strided_slice %116 {offsets = [0, 6], sizes = [32, 8], strides = [1, 1]} : vector<32x15xf32> to vector<32x8xf32>
    %125 = arith.select %123, %124, %121 : vector<32x8xi1>, vector<32x8xf32>
    %c2_i32_24 = arith.constant 2 : i32
    %126 = vector.broadcast %c2_i32_24 : i32 to vector<32x8xi32>
    %127 = arith.cmpi eq, %16, %126 : vector<32x8xi32>
    %128 = vector.extract_strided_slice %116 {offsets = [0, 5], sizes = [32, 8], strides = [1, 1]} : vector<32x15xf32> to vector<32x8xf32>
    %129 = arith.select %127, %128, %125 : vector<32x8xi1>, vector<32x8xf32>
    %c3_i32_25 = arith.constant 3 : i32
    %130 = vector.broadcast %c3_i32_25 : i32 to vector<32x8xi32>
    %131 = arith.cmpi eq, %16, %130 : vector<32x8xi32>
    %132 = vector.extract_strided_slice %116 {offsets = [0, 4], sizes = [32, 8], strides = [1, 1]} : vector<32x15xf32> to vector<32x8xf32>
    %133 = arith.select %131, %132, %129 : vector<32x8xi1>, vector<32x8xf32>
    %c4_i32_26 = arith.constant 4 : i32
    %134 = vector.broadcast %c4_i32_26 : i32 to vector<32x8xi32>
    %135 = arith.cmpi eq, %16, %134 : vector<32x8xi32>
    %136 = vector.extract_strided_slice %116 {offsets = [0, 3], sizes = [32, 8], strides = [1, 1]} : vector<32x15xf32> to vector<32x8xf32>
    %137 = arith.select %135, %136, %133 : vector<32x8xi1>, vector<32x8xf32>
    %c5_i32_27 = arith.constant 5 : i32
    %138 = vector.broadcast %c5_i32_27 : i32 to vector<32x8xi32>
    %139 = arith.cmpi eq, %16, %138 : vector<32x8xi32>
    %140 = vector.extract_strided_slice %116 {offsets = [0, 2], sizes = [32, 8], strides = [1, 1]} : vector<32x15xf32> to vector<32x8xf32>
    %141 = arith.select %139, %140, %137 : vector<32x8xi1>, vector<32x8xf32>
    %c6_i32_28 = arith.constant 6 : i32
    %142 = vector.broadcast %c6_i32_28 : i32 to vector<32x8xi32>
    %143 = arith.cmpi eq, %16, %142 : vector<32x8xi32>
    %144 = vector.extract_strided_slice %116 {offsets = [0, 1], sizes = [32, 8], strides = [1, 1]} : vector<32x15xf32> to vector<32x8xf32>
    %145 = arith.select %143, %144, %141 : vector<32x8xi1>, vector<32x8xf32>
    %c7_i32_29 = arith.constant 7 : i32
    %146 = vector.broadcast %c7_i32_29 : i32 to vector<32x8xi32>
    %147 = arith.cmpi eq, %16, %146 : vector<32x8xi32>
    %148 = vector.extract_strided_slice %116 {offsets = [0, 0], sizes = [32, 8], strides = [1, 1]} : vector<32x15xf32> to vector<32x8xf32>
    %149 = arith.select %147, %148, %145 : vector<32x8xi1>, vector<32x8xf32>
    %150 = arith.addf %115, %149 : vector<32x8xf32>
    %cst_30 = arith.constant 0.353553385 : f32
    %151 = vector.broadcast %cst_30 : f32 to vector<32x8xf32>
    %152 = arith.mulf %150, %151 : vector<32x8xf32>
    %cst_31 = arith.constant dense<0xFF800000> : vector<32xf32>
    %153 = vector.multi_reduction <maximumf>, %152, %cst_31 [1] : vector<32x8xf32> to vector<32xf32>
    %154 = vector.shape_cast %153 : vector<32xf32> to vector<32x1xf32>
    %155 = vector.broadcast %154 : vector<32x1xf32> to vector<32x8xf32>
    %156 = arith.subf %152, %155 : vector<32x8xf32>
    %157 = math.exp %156 : vector<32x8xf32>
    %cst_32 = arith.constant dense<0.000000e+00> : vector<32xf32>
    %158 = vector.multi_reduction <add>, %157, %cst_32 [1] : vector<32x8xf32> to vector<32xf32>
    %159 = vector.shape_cast %158 : vector<32xf32> to vector<32x1xf32>
    %160 = tpu.reciprocal %159 {approx = true} : vector<32x1xf32> -> vector<32x1xf32>
    %161 = vector.broadcast %160 : vector<32x1xf32> to vector<32x8xf32>
    %162 = arith.mulf %157, %161 : vector<32x8xf32>
    %cst_33 = arith.constant dense<0.000000e+00> : vector<32x32xf32>
    %163 = tpu.matmul %162, %100, %cst_33 {dimension_numbers = #tpu.dot_dimension_numbers<[1], [0], [0], [1], [0, 0, 1, 1], [], []>} : vector<32x8xf32>, vector<8x32xf32>, vector<32x32xf32> -> vector<32x32xf32>
    %164 = vector.extract_strided_slice %163 {offsets = [0, 0], sizes = [8, 32], strides = [1, 1]} : vector<32x32xf32> to vector<8x32xf32>
    %165 = vector.broadcast %10 : vector<1x32xf32> to vector<8x32xf32>
    %166 = arith.mulf %165, %164 : vector<8x32xf32>
    %167 = vector.extract_strided_slice %163 {offsets = [8, 0], sizes = [8, 32], strides = [1, 1]} : vector<32x32xf32> to vector<8x32xf32>
    %168 = vector.broadcast %11 : vector<1x32xf32> to vector<8x32xf32>
    %169 = arith.mulf %168, %167 : vector<8x32xf32>
    %170 = arith.addf %166, %169 : vector<8x32xf32>
    %171 = vector.extract_strided_slice %163 {offsets = [16, 0], sizes = [8, 32], strides = [1, 1]} : vector<32x32xf32> to vector<8x32xf32>
    %172 = vector.broadcast %12 : vector<1x32xf32> to vector<8x32xf32>
    %173 = arith.mulf %172, %171 : vector<8x32xf32>
    %174 = arith.addf %170, %173 : vector<8x32xf32>
    %175 = vector.extract_strided_slice %163 {offsets = [24, 0], sizes = [8, 32], strides = [1, 1]} : vector<32x32xf32> to vector<8x32xf32>
    %176 = vector.broadcast %13 : vector<1x32xf32> to vector<8x32xf32>
    %177 = arith.mulf %176, %175 : vector<8x32xf32>
    %178 = arith.addf %174, %177 : vector<8x32xf32>
    %179 = tpu.concatenate %97, %178 in 0 : vector<8x32xf32>, vector<8x32xf32> -> vector<16x32xf32>
    %c0_34 = arith.constant 0 : index
    %c256 = arith.constant 256 : index
    %180 = vector.load %arg3[%c0_34, %c256] : memref<32x768xf32, #tpu.memory_space<vmem>>, vector<32x32xf32>
    %cst_35 = arith.constant dense<0.000000e+00> : vector<16x32xf32>
    %181 = tpu.matmul %179, %180, %cst_35 {dimension_numbers = #tpu.dot_dimension_numbers<[1], [0], [0], [1], [0, 0, 1, 1], [], []>} : vector<16x32xf32>, vector<32x32xf32>, vector<16x32xf32> -> vector<16x32xf32>
    %182 = arith.addf %1, %181 : vector<16x32xf32>
    %c1 = arith.constant 1 : index
    %c0_36 = arith.constant 0 : index
    %183 = vector.load %arg2[%c1, %c0_36] : memref<24x128xf32, #tpu.memory_space<vmem>>, vector<1x32xf32>
    %184 = vector.broadcast %183 : vector<1x32xf32> to vector<16x32xf32>
    %185 = arith.addf %182, %184 : vector<16x32xf32>
    %c2 = arith.constant 2 : index
    %c0_37 = arith.constant 0 : index
    %186 = vector.load %arg2[%c2, %c0_37] : memref<24x128xf32, #tpu.memory_space<vmem>>, vector<1x32xf32>
    %c3 = arith.constant 3 : index
    %c0_38 = arith.constant 0 : index
    %187 = vector.load %arg2[%c3, %c0_38] : memref<24x128xf32, #tpu.memory_space<vmem>>, vector<1x32xf32>
    %cst_39 = arith.constant dense<0.000000e+00> : vector<16xf32>
    %188 = vector.multi_reduction <add>, %185, %cst_39 [1] : vector<16x32xf32> to vector<16xf32>
    %189 = vector.shape_cast %188 : vector<16xf32> to vector<16x1xf32>
    %cst_40 = arith.constant 3.200000e+01 : f32
    %190 = vector.broadcast %cst_40 : f32 to vector<16x1xf32>
    %191 = arith.divf %189, %190 : vector<16x1xf32>
    %192 = vector.broadcast %191 : vector<16x1xf32> to vector<16x32xf32>
    %193 = arith.subf %185, %192 : vector<16x32xf32>
    %194 = arith.mulf %193, %193 : vector<16x32xf32>
    %cst_41 = arith.constant dense<0.000000e+00> : vector<16xf32>
    %195 = vector.multi_reduction <add>, %194, %cst_41 [1] : vector<16x32xf32> to vector<16xf32>
    %196 = vector.shape_cast %195 : vector<16xf32> to vector<16x1xf32>
    %cst_42 = arith.constant 3.200000e+01 : f32
    %197 = vector.broadcast %cst_42 : f32 to vector<16x1xf32>
    %198 = arith.divf %196, %197 : vector<16x1xf32>
    %cst_43 = arith.constant 9.99999974E-6 : f32
    %199 = vector.broadcast %cst_43 : f32 to vector<16x1xf32>
    %200 = arith.addf %198, %199 : vector<16x1xf32>
    %201 = math.rsqrt %200 : vector<16x1xf32>
    %202 = vector.broadcast %201 : vector<16x1xf32> to vector<16x32xf32>
    %203 = arith.mulf %193, %202 : vector<16x32xf32>
    %204 = vector.broadcast %186 : vector<1x32xf32> to vector<16x32xf32>
    %205 = arith.mulf %203, %204 : vector<16x32xf32>
    %206 = vector.broadcast %187 : vector<1x32xf32> to vector<16x32xf32>
    %207 = arith.addf %205, %206 : vector<16x32xf32>
    %c0_44 = arith.constant 0 : index
    %c512 = arith.constant 512 : index
    %208 = vector.load %arg3[%c0_44, %c512] : memref<32x768xf32, #tpu.memory_space<vmem>>, vector<32x128xf32>
    %cst_45 = arith.constant dense<0.000000e+00> : vector<16x128xf32>
    %209 = tpu.matmul %207, %208, %cst_45 {dimension_numbers = #tpu.dot_dimension_numbers<[1], [0], [0], [1], [0, 0, 1, 1], [], []>} : vector<16x32xf32>, vector<32x128xf32>, vector<16x128xf32> -> vector<16x128xf32>
    %c4 = arith.constant 4 : index
    %c0_46 = arith.constant 0 : index
    %210 = vector.load %arg2[%c4, %c0_46] : memref<24x128xf32, #tpu.memory_space<vmem>>, vector<1x128xf32>
    %211 = vector.broadcast %210 : vector<1x128xf32> to vector<16x128xf32>
    %212 = arith.addf %209, %211 : vector<16x128xf32>
    %213 = arith.negf %212 : vector<16x128xf32>
    %214 = math.exp %213 : vector<16x128xf32>
    %cst_47 = arith.constant 1.000000e+00 : f32
    %215 = vector.broadcast %cst_47 : f32 to vector<16x128xf32>
    %216 = arith.addf %215, %214 : vector<16x128xf32>
    %217 = arith.divf %215, %216 : vector<16x128xf32>
    %218 = arith.mulf %212, %217 : vector<16x128xf32>
    %c0_48 = arith.constant 0 : index
    %c0_49 = arith.constant 0 : index
    %219 = vector.load %arg4[%c0_48, %c0_49] : memref<344x32xf32, #tpu.memory_space<vmem>>, vector<128x32xf32>
    %cst_50 = arith.constant dense<0.000000e+00> : vector<16x32xf32>
    %220 = tpu.matmul %218, %219, %cst_50 {dimension_numbers = #tpu.dot_dimension_numbers<[1], [0], [0], [1], [0, 0, 1, 1], [], []>} : vector<16x128xf32>, vector<128x32xf32>, vector<16x32xf32> -> vector<16x32xf32>
    %c5 = arith.constant 5 : index
    %c0_51 = arith.constant 0 : index
    %221 = vector.load %arg2[%c5, %c0_51] : memref<24x128xf32, #tpu.memory_space<vmem>>, vector<1x32xf32>
    %222 = vector.broadcast %221 : vector<1x32xf32> to vector<16x32xf32>
    %223 = arith.addf %220, %222 : vector<16x32xf32>
    %cst_52 = arith.constant 1.000000e+00 : f32
    %224 = vector.broadcast %cst_52 : f32 to vector<16x32xf32>
    %225 = arith.mulf %224, %223 : vector<16x32xf32>
    %226 = arith.addf %207, %225 : vector<16x32xf32>
    %c6 = arith.constant 6 : index
    %c0_53 = arith.constant 0 : index
    %227 = vector.load %arg2[%c6, %c0_53] : memref<24x128xf32, #tpu.memory_space<vmem>>, vector<1x32xf32>
    %c7 = arith.constant 7 : index
    %c0_54 = arith.constant 0 : index
    %228 = vector.load %arg2[%c7, %c0_54] : memref<24x128xf32, #tpu.memory_space<vmem>>, vector<1x32xf32>
    %cst_55 = arith.constant dense<0.000000e+00> : vector<16xf32>
    %229 = vector.multi_reduction <add>, %226, %cst_55 [1] : vector<16x32xf32> to vector<16xf32>
    %230 = vector.shape_cast %229 : vector<16xf32> to vector<16x1xf32>
    %cst_56 = arith.constant 3.200000e+01 : f32
    %231 = vector.broadcast %cst_56 : f32 to vector<16x1xf32>
    %232 = arith.divf %230, %231 : vector<16x1xf32>
    %233 = vector.broadcast %232 : vector<16x1xf32> to vector<16x32xf32>
    %234 = arith.subf %226, %233 : vector<16x32xf32>
    %235 = arith.mulf %234, %234 : vector<16x32xf32>
    %cst_57 = arith.constant dense<0.000000e+00> : vector<16xf32>
    %236 = vector.multi_reduction <add>, %235, %cst_57 [1] : vector<16x32xf32> to vector<16xf32>
    %237 = vector.shape_cast %236 : vector<16xf32> to vector<16x1xf32>
    %cst_58 = arith.constant 3.200000e+01 : f32
    %238 = vector.broadcast %cst_58 : f32 to vector<16x1xf32>
    %239 = arith.divf %237, %238 : vector<16x1xf32>
    %cst_59 = arith.constant 9.99999974E-6 : f32
    %240 = vector.broadcast %cst_59 : f32 to vector<16x1xf32>
    %241 = arith.addf %239, %240 : vector<16x1xf32>
    %242 = math.rsqrt %241 : vector<16x1xf32>
    %243 = vector.broadcast %242 : vector<16x1xf32> to vector<16x32xf32>
    %244 = arith.mulf %234, %243 : vector<16x32xf32>
    %245 = vector.broadcast %227 : vector<1x32xf32> to vector<16x32xf32>
    %246 = arith.mulf %244, %245 : vector<16x32xf32>
    %247 = vector.broadcast %228 : vector<1x32xf32> to vector<16x32xf32>
    %248 = arith.addf %246, %247 : vector<16x32xf32>
    %c0_60 = arith.constant 0 : index
    %c128 = arith.constant 128 : index
    %249 = vector.load %arg3[%c0_60, %c128] : memref<32x768xf32, #tpu.memory_space<vmem>>, vector<32x64xf32>
    %cst_61 = arith.constant dense<0.000000e+00> : vector<16x64xf32>
    %250 = tpu.matmul %248, %249, %cst_61 {dimension_numbers = #tpu.dot_dimension_numbers<[1], [0], [0], [1], [0, 0, 1, 1], [], []>} : vector<16x32xf32>, vector<32x64xf32>, vector<16x64xf32> -> vector<16x64xf32>
    %c8 = arith.constant 8 : index
    %c0_62 = arith.constant 0 : index
    %251 = vector.load %arg2[%c8, %c0_62] : memref<24x128xf32, #tpu.memory_space<vmem>>, vector<1x64xf32>
    %252 = vector.broadcast %251 : vector<1x64xf32> to vector<16x64xf32>
    %253 = arith.addf %250, %252 : vector<16x64xf32>
    %254 = vector.extract_strided_slice %253 {offsets = [0, 0], sizes = [16, 32], strides = [1, 1]} : vector<16x64xf32> to vector<16x32xf32>
    %255 = vector.extract_strided_slice %253 {offsets = [0, 32], sizes = [16, 32], strides = [1, 1]} : vector<16x64xf32> to vector<16x32xf32>
    %256 = arith.negf %255 : vector<16x32xf32>
    %257 = math.exp %256 : vector<16x32xf32>
    %cst_63 = arith.constant 1.000000e+00 : f32
    %258 = vector.broadcast %cst_63 : f32 to vector<16x32xf32>
    %259 = arith.addf %258, %257 : vector<16x32xf32>
    %260 = arith.divf %258, %259 : vector<16x32xf32>
    %261 = arith.mulf %254, %260 : vector<16x32xf32>
    %c256_64 = arith.constant 256 : index
    %c0_65 = arith.constant 0 : index
    %262 = vector.load %arg4[%c256_64, %c0_65] : memref<344x32xf32, #tpu.memory_space<vmem>>, vector<7x32xf32>
    %cst_66 = arith.constant 0.000000e+00 : f32
    %263 = vector.broadcast %cst_66 : f32 to vector<3x32xf32>
    %264 = vector.extract_strided_slice %261 {offsets = [0, 0], sizes = [8, 32], strides = [1, 1]} : vector<16x32xf32> to vector<8x32xf32>
    %265 = tpu.concatenate %263, %264, %263 in 0 : vector<3x32xf32>, vector<8x32xf32>, vector<3x32xf32> -> vector<14x32xf32>
    %266 = vector.extract_strided_slice %265 {offsets = [0, 0], sizes = [8, 32], strides = [1, 1]} : vector<14x32xf32> to vector<8x32xf32>
    %267 = vector.extract_strided_slice %262 {offsets = [0, 0], sizes = [1, 32], strides = [1, 1]} : vector<7x32xf32> to vector<1x32xf32>
    %268 = vector.broadcast %267 : vector<1x32xf32> to vector<8x32xf32>
    %269 = arith.mulf %266, %268 : vector<8x32xf32>
    %270 = vector.extract_strided_slice %265 {offsets = [1, 0], sizes = [8, 32], strides = [1, 1]} : vector<14x32xf32> to vector<8x32xf32>
    %271 = vector.extract_strided_slice %262 {offsets = [1, 0], sizes = [1, 32], strides = [1, 1]} : vector<7x32xf32> to vector<1x32xf32>
    %272 = vector.broadcast %271 : vector<1x32xf32> to vector<8x32xf32>
    %273 = arith.mulf %270, %272 : vector<8x32xf32>
    %274 = arith.addf %269, %273 : vector<8x32xf32>
    %275 = vector.extract_strided_slice %265 {offsets = [2, 0], sizes = [8, 32], strides = [1, 1]} : vector<14x32xf32> to vector<8x32xf32>
    %276 = vector.extract_strided_slice %262 {offsets = [2, 0], sizes = [1, 32], strides = [1, 1]} : vector<7x32xf32> to vector<1x32xf32>
    %277 = vector.broadcast %276 : vector<1x32xf32> to vector<8x32xf32>
    %278 = arith.mulf %275, %277 : vector<8x32xf32>
    %279 = arith.addf %274, %278 : vector<8x32xf32>
    %280 = vector.extract_strided_slice %265 {offsets = [3, 0], sizes = [8, 32], strides = [1, 1]} : vector<14x32xf32> to vector<8x32xf32>
    %281 = vector.extract_strided_slice %262 {offsets = [3, 0], sizes = [1, 32], strides = [1, 1]} : vector<7x32xf32> to vector<1x32xf32>
    %282 = vector.broadcast %281 : vector<1x32xf32> to vector<8x32xf32>
    %283 = arith.mulf %280, %282 : vector<8x32xf32>
    %284 = arith.addf %279, %283 : vector<8x32xf32>
    %285 = vector.extract_strided_slice %265 {offsets = [4, 0], sizes = [8, 32], strides = [1, 1]} : vector<14x32xf32> to vector<8x32xf32>
    %286 = vector.extract_strided_slice %262 {offsets = [4, 0], sizes = [1, 32], strides = [1, 1]} : vector<7x32xf32> to vector<1x32xf32>
    %287 = vector.broadcast %286 : vector<1x32xf32> to vector<8x32xf32>
    %288 = arith.mulf %285, %287 : vector<8x32xf32>
    %289 = arith.addf %284, %288 : vector<8x32xf32>
    %290 = vector.extract_strided_slice %265 {offsets = [5, 0], sizes = [8, 32], strides = [1, 1]} : vector<14x32xf32> to vector<8x32xf32>
    %291 = vector.extract_strided_slice %262 {offsets = [5, 0], sizes = [1, 32], strides = [1, 1]} : vector<7x32xf32> to vector<1x32xf32>
    %292 = vector.broadcast %291 : vector<1x32xf32> to vector<8x32xf32>
    %293 = arith.mulf %290, %292 : vector<8x32xf32>
    %294 = arith.addf %289, %293 : vector<8x32xf32>
    %295 = vector.extract_strided_slice %265 {offsets = [6, 0], sizes = [8, 32], strides = [1, 1]} : vector<14x32xf32> to vector<8x32xf32>
    %296 = vector.extract_strided_slice %262 {offsets = [6, 0], sizes = [1, 32], strides = [1, 1]} : vector<7x32xf32> to vector<1x32xf32>
    %297 = vector.broadcast %296 : vector<1x32xf32> to vector<8x32xf32>
    %298 = arith.mulf %295, %297 : vector<8x32xf32>
    %299 = arith.addf %294, %298 : vector<8x32xf32>
    %300 = vector.extract_strided_slice %261 {offsets = [8, 0], sizes = [8, 32], strides = [1, 1]} : vector<16x32xf32> to vector<8x32xf32>
    %301 = tpu.concatenate %263, %300, %263 in 0 : vector<3x32xf32>, vector<8x32xf32>, vector<3x32xf32> -> vector<14x32xf32>
    %302 = vector.extract_strided_slice %301 {offsets = [0, 0], sizes = [8, 32], strides = [1, 1]} : vector<14x32xf32> to vector<8x32xf32>
    %303 = vector.extract_strided_slice %262 {offsets = [0, 0], sizes = [1, 32], strides = [1, 1]} : vector<7x32xf32> to vector<1x32xf32>
    %304 = vector.broadcast %303 : vector<1x32xf32> to vector<8x32xf32>
    %305 = arith.mulf %302, %304 : vector<8x32xf32>
    %306 = vector.extract_strided_slice %301 {offsets = [1, 0], sizes = [8, 32], strides = [1, 1]} : vector<14x32xf32> to vector<8x32xf32>
    %307 = vector.extract_strided_slice %262 {offsets = [1, 0], sizes = [1, 32], strides = [1, 1]} : vector<7x32xf32> to vector<1x32xf32>
    %308 = vector.broadcast %307 : vector<1x32xf32> to vector<8x32xf32>
    %309 = arith.mulf %306, %308 : vector<8x32xf32>
    %310 = arith.addf %305, %309 : vector<8x32xf32>
    %311 = vector.extract_strided_slice %301 {offsets = [2, 0], sizes = [8, 32], strides = [1, 1]} : vector<14x32xf32> to vector<8x32xf32>
    %312 = vector.extract_strided_slice %262 {offsets = [2, 0], sizes = [1, 32], strides = [1, 1]} : vector<7x32xf32> to vector<1x32xf32>
    %313 = vector.broadcast %312 : vector<1x32xf32> to vector<8x32xf32>
    %314 = arith.mulf %311, %313 : vector<8x32xf32>
    %315 = arith.addf %310, %314 : vector<8x32xf32>
    %316 = vector.extract_strided_slice %301 {offsets = [3, 0], sizes = [8, 32], strides = [1, 1]} : vector<14x32xf32> to vector<8x32xf32>
    %317 = vector.extract_strided_slice %262 {offsets = [3, 0], sizes = [1, 32], strides = [1, 1]} : vector<7x32xf32> to vector<1x32xf32>
    %318 = vector.broadcast %317 : vector<1x32xf32> to vector<8x32xf32>
    %319 = arith.mulf %316, %318 : vector<8x32xf32>
    %320 = arith.addf %315, %319 : vector<8x32xf32>
    %321 = vector.extract_strided_slice %301 {offsets = [4, 0], sizes = [8, 32], strides = [1, 1]} : vector<14x32xf32> to vector<8x32xf32>
    %322 = vector.extract_strided_slice %262 {offsets = [4, 0], sizes = [1, 32], strides = [1, 1]} : vector<7x32xf32> to vector<1x32xf32>
    %323 = vector.broadcast %322 : vector<1x32xf32> to vector<8x32xf32>
    %324 = arith.mulf %321, %323 : vector<8x32xf32>
    %325 = arith.addf %320, %324 : vector<8x32xf32>
    %326 = vector.extract_strided_slice %301 {offsets = [5, 0], sizes = [8, 32], strides = [1, 1]} : vector<14x32xf32> to vector<8x32xf32>
    %327 = vector.extract_strided_slice %262 {offsets = [5, 0], sizes = [1, 32], strides = [1, 1]} : vector<7x32xf32> to vector<1x32xf32>
    %328 = vector.broadcast %327 : vector<1x32xf32> to vector<8x32xf32>
    %329 = arith.mulf %326, %328 : vector<8x32xf32>
    %330 = arith.addf %325, %329 : vector<8x32xf32>
    %331 = vector.extract_strided_slice %301 {offsets = [6, 0], sizes = [8, 32], strides = [1, 1]} : vector<14x32xf32> to vector<8x32xf32>
    %332 = vector.extract_strided_slice %262 {offsets = [6, 0], sizes = [1, 32], strides = [1, 1]} : vector<7x32xf32> to vector<1x32xf32>
    %333 = vector.broadcast %332 : vector<1x32xf32> to vector<8x32xf32>
    %334 = arith.mulf %331, %333 : vector<8x32xf32>
    %335 = arith.addf %330, %334 : vector<8x32xf32>
    %336 = tpu.concatenate %299, %335 in 0 : vector<8x32xf32>, vector<8x32xf32> -> vector<16x32xf32>
    %c9 = arith.constant 9 : index
    %c0_67 = arith.constant 0 : index
    %337 = vector.load %arg2[%c9, %c0_67] : memref<24x128xf32, #tpu.memory_space<vmem>>, vector<1x32xf32>
    %338 = vector.broadcast %337 : vector<1x32xf32> to vector<16x32xf32>
    %339 = arith.addf %336, %338 : vector<16x32xf32>
    %c10 = arith.constant 10 : index
    %c0_68 = arith.constant 0 : index
    %340 = vector.load %arg2[%c10, %c0_68] : memref<24x128xf32, #tpu.memory_space<vmem>>, vector<1x32xf32>
    %341 = vector.broadcast %340 : vector<1x32xf32> to vector<16x32xf32>
    %342 = arith.mulf %339, %341 : vector<16x32xf32>
    %c11 = arith.constant 11 : index
    %c0_69 = arith.constant 0 : index
    %343 = vector.load %arg2[%c11, %c0_69] : memref<24x128xf32, #tpu.memory_space<vmem>>, vector<1x32xf32>
    %344 = vector.broadcast %343 : vector<1x32xf32> to vector<16x32xf32>
    %345 = arith.addf %342, %344 : vector<16x32xf32>
    %346 = arith.negf %345 : vector<16x32xf32>
    %347 = math.exp %346 : vector<16x32xf32>
    %cst_70 = arith.constant 1.000000e+00 : f32
    %348 = vector.broadcast %cst_70 : f32 to vector<16x32xf32>
    %349 = arith.addf %348, %347 : vector<16x32xf32>
    %350 = arith.divf %348, %349 : vector<16x32xf32>
    %351 = arith.mulf %345, %350 : vector<16x32xf32>
    %c0_71 = arith.constant 0 : index
    %c384 = arith.constant 384 : index
    %352 = vector.load %arg3[%c0_71, %c384] : memref<32x768xf32, #tpu.memory_space<vmem>>, vector<32x32xf32>
    %cst_72 = arith.constant dense<0.000000e+00> : vector<16x32xf32>
    %353 = tpu.matmul %351, %352, %cst_72 {dimension_numbers = #tpu.dot_dimension_numbers<[1], [0], [0], [1], [0, 0, 1, 1], [], []>} : vector<16x32xf32>, vector<32x32xf32>, vector<16x32xf32> -> vector<16x32xf32>
    %354 = arith.addf %248, %353 : vector<16x32xf32>
    %c12 = arith.constant 12 : index
    %c0_73 = arith.constant 0 : index
    %355 = vector.load %arg2[%c12, %c0_73] : memref<24x128xf32, #tpu.memory_space<vmem>>, vector<1x32xf32>
    %356 = vector.broadcast %355 : vector<1x32xf32> to vector<16x32xf32>
    %357 = arith.addf %354, %356 : vector<16x32xf32>
    %c13 = arith.constant 13 : index
    %c0_74 = arith.constant 0 : index
    %358 = vector.load %arg2[%c13, %c0_74] : memref<24x128xf32, #tpu.memory_space<vmem>>, vector<1x32xf32>
    %c14 = arith.constant 14 : index
    %c0_75 = arith.constant 0 : index
    %359 = vector.load %arg2[%c14, %c0_75] : memref<24x128xf32, #tpu.memory_space<vmem>>, vector<1x32xf32>
    %cst_76 = arith.constant dense<0.000000e+00> : vector<16xf32>
    %360 = vector.multi_reduction <add>, %357, %cst_76 [1] : vector<16x32xf32> to vector<16xf32>
    %361 = vector.shape_cast %360 : vector<16xf32> to vector<16x1xf32>
    %cst_77 = arith.constant 3.200000e+01 : f32
    %362 = vector.broadcast %cst_77 : f32 to vector<16x1xf32>
    %363 = arith.divf %361, %362 : vector<16x1xf32>
    %364 = vector.broadcast %363 : vector<16x1xf32> to vector<16x32xf32>
    %365 = arith.subf %357, %364 : vector<16x32xf32>
    %366 = arith.mulf %365, %365 : vector<16x32xf32>
    %cst_78 = arith.constant dense<0.000000e+00> : vector<16xf32>
    %367 = vector.multi_reduction <add>, %366, %cst_78 [1] : vector<16x32xf32> to vector<16xf32>
    %368 = vector.shape_cast %367 : vector<16xf32> to vector<16x1xf32>
    %cst_79 = arith.constant 3.200000e+01 : f32
    %369 = vector.broadcast %cst_79 : f32 to vector<16x1xf32>
    %370 = arith.divf %368, %369 : vector<16x1xf32>
    %cst_80 = arith.constant 9.99999974E-6 : f32
    %371 = vector.broadcast %cst_80 : f32 to vector<16x1xf32>
    %372 = arith.addf %370, %371 : vector<16x1xf32>
    %373 = math.rsqrt %372 : vector<16x1xf32>
    %374 = vector.broadcast %373 : vector<16x1xf32> to vector<16x32xf32>
    %375 = arith.mulf %365, %374 : vector<16x32xf32>
    %376 = vector.broadcast %358 : vector<1x32xf32> to vector<16x32xf32>
    %377 = arith.mulf %375, %376 : vector<16x32xf32>
    %378 = vector.broadcast %359 : vector<1x32xf32> to vector<16x32xf32>
    %379 = arith.addf %377, %378 : vector<16x32xf32>
    %c0_81 = arith.constant 0 : index
    %c640 = arith.constant 640 : index
    %380 = vector.load %arg3[%c0_81, %c640] : memref<32x768xf32, #tpu.memory_space<vmem>>, vector<32x128xf32>
    %cst_82 = arith.constant dense<0.000000e+00> : vector<16x128xf32>
    %381 = tpu.matmul %379, %380, %cst_82 {dimension_numbers = #tpu.dot_dimension_numbers<[1], [0], [0], [1], [0, 0, 1, 1], [], []>} : vector<16x32xf32>, vector<32x128xf32>, vector<16x128xf32> -> vector<16x128xf32>
    %c15 = arith.constant 15 : index
    %c0_83 = arith.constant 0 : index
    %382 = vector.load %arg2[%c15, %c0_83] : memref<24x128xf32, #tpu.memory_space<vmem>>, vector<1x128xf32>
    %383 = vector.broadcast %382 : vector<1x128xf32> to vector<16x128xf32>
    %384 = arith.addf %381, %383 : vector<16x128xf32>
    %385 = arith.negf %384 : vector<16x128xf32>
    %386 = math.exp %385 : vector<16x128xf32>
    %cst_84 = arith.constant 1.000000e+00 : f32
    %387 = vector.broadcast %cst_84 : f32 to vector<16x128xf32>
    %388 = arith.addf %387, %386 : vector<16x128xf32>
    %389 = arith.divf %387, %388 : vector<16x128xf32>
    %390 = arith.mulf %384, %389 : vector<16x128xf32>
    %c128_85 = arith.constant 128 : index
    %c0_86 = arith.constant 0 : index
    %391 = vector.load %arg4[%c128_85, %c0_86] : memref<344x32xf32, #tpu.memory_space<vmem>>, vector<128x32xf32>
    %cst_87 = arith.constant dense<0.000000e+00> : vector<16x32xf32>
    %392 = tpu.matmul %390, %391, %cst_87 {dimension_numbers = #tpu.dot_dimension_numbers<[1], [0], [0], [1], [0, 0, 1, 1], [], []>} : vector<16x128xf32>, vector<128x32xf32>, vector<16x32xf32> -> vector<16x32xf32>
    %c16 = arith.constant 16 : index
    %c0_88 = arith.constant 0 : index
    %393 = vector.load %arg2[%c16, %c0_88] : memref<24x128xf32, #tpu.memory_space<vmem>>, vector<1x32xf32>
    %394 = vector.broadcast %393 : vector<1x32xf32> to vector<16x32xf32>
    %395 = arith.addf %392, %394 : vector<16x32xf32>
    %cst_89 = arith.constant 1.000000e+00 : f32
    %396 = vector.broadcast %cst_89 : f32 to vector<16x32xf32>
    %397 = arith.mulf %396, %395 : vector<16x32xf32>
    %398 = arith.addf %379, %397 : vector<16x32xf32>
    %c17 = arith.constant 17 : index
    %c0_90 = arith.constant 0 : index
    %399 = vector.load %arg2[%c17, %c0_90] : memref<24x128xf32, #tpu.memory_space<vmem>>, vector<1x32xf32>
    %c18 = arith.constant 18 : index
    %c0_91 = arith.constant 0 : index
    %400 = vector.load %arg2[%c18, %c0_91] : memref<24x128xf32, #tpu.memory_space<vmem>>, vector<1x32xf32>
    %cst_92 = arith.constant dense<0.000000e+00> : vector<16xf32>
    %401 = vector.multi_reduction <add>, %398, %cst_92 [1] : vector<16x32xf32> to vector<16xf32>
    %402 = vector.shape_cast %401 : vector<16xf32> to vector<16x1xf32>
    %cst_93 = arith.constant 3.200000e+01 : f32
    %403 = vector.broadcast %cst_93 : f32 to vector<16x1xf32>
    %404 = arith.divf %402, %403 : vector<16x1xf32>
    %405 = vector.broadcast %404 : vector<16x1xf32> to vector<16x32xf32>
    %406 = arith.subf %398, %405 : vector<16x32xf32>
    %407 = arith.mulf %406, %406 : vector<16x32xf32>
    %cst_94 = arith.constant dense<0.000000e+00> : vector<16xf32>
    %408 = vector.multi_reduction <add>, %407, %cst_94 [1] : vector<16x32xf32> to vector<16xf32>
    %409 = vector.shape_cast %408 : vector<16xf32> to vector<16x1xf32>
    %cst_95 = arith.constant 3.200000e+01 : f32
    %410 = vector.broadcast %cst_95 : f32 to vector<16x1xf32>
    %411 = arith.divf %409, %410 : vector<16x1xf32>
    %cst_96 = arith.constant 9.99999974E-6 : f32
    %412 = vector.broadcast %cst_96 : f32 to vector<16x1xf32>
    %413 = arith.addf %411, %412 : vector<16x1xf32>
    %414 = math.rsqrt %413 : vector<16x1xf32>
    %415 = vector.broadcast %414 : vector<16x1xf32> to vector<16x32xf32>
    %416 = arith.mulf %406, %415 : vector<16x32xf32>
    %417 = vector.broadcast %399 : vector<1x32xf32> to vector<16x32xf32>
    %418 = arith.mulf %416, %417 : vector<16x32xf32>
    %419 = vector.broadcast %400 : vector<1x32xf32> to vector<16x32xf32>
    %420 = arith.addf %418, %419 : vector<16x32xf32>
    %421 = vector.shape_cast %420 : vector<16x32xf32> to vector<2x8x32xf32>
    %c0_97 = arith.constant 0 : index
    %c0_98 = arith.constant 0 : index
    %c0_99 = arith.constant 0 : index
    %422 = vector.load %arg5[%c0_97, %c0_98, %c0_99] : memref<2x8x32xf32, #tpu.memory_space<vmem>>, vector<2x8x32xf32>
    tpu.vector_store %arg5[%c0_97, %c0_98, %c0_99], %421 {strides = array<i32>} : memref<2x8x32xf32, #tpu.memory_space<vmem>>, vector<2x8x32xf32>,
    return
  }
  func.func @transform_0(%arg0: i32) -> (i32, i32, i32) {
    %c0_i32 = arith.constant 0 : i32
    %c0_i32_0 = arith.constant 0 : i32
    %c0_i32_1 = arith.constant 0 : i32
    return %arg0, %c0_i32, %c0_i32_0 : i32, i32, i32
  }
  func.func @transform_1(%arg0: i32) -> (i32, i32) {
    %c0_i32 = arith.constant 0 : i32
    %c0_i32_0 = arith.constant 0 : i32
    %c0_i32_1 = arith.constant 0 : i32
    return %c0_i32, %c0_i32_0 : i32, i32
  }
  func.func @transform_2(%arg0: i32) -> (i32, i32) {
    %c0_i32 = arith.constant 0 : i32
    %c0_i32_0 = arith.constant 0 : i32
    %c0_i32_1 = arith.constant 0 : i32
    return %c0_i32, %c0_i32_0 : i32, i32
  }
  func.func @transform_3(%arg0: i32) -> (i32, i32) {
    %c0_i32 = arith.constant 0 : i32
    %c0_i32_0 = arith.constant 0 : i32
    %c0_i32_1 = arith.constant 0 : i32
    return %c0_i32, %c0_i32_0 : i32, i32
  }
  func.func @transform_4(%arg0: i32) -> (i32, i32, i32) {
    %c0_i32 = arith.constant 0 : i32
    %c0_i32_0 = arith.constant 0 : i32
    %c0_i32_1 = arith.constant 0 : i32
    return %arg0, %c0_i32, %c0_i32_0 : i32, i32, i32
  }
}

</mosaic_0001>

<bundles_post_ra>
// kernel: squeezeformer_block.1
= control target key start
LH: loop header
LB: loop body
LE: loop exit
PB: predicated region body
PF: predicated region fallthrough
CT: control target
= control target key end

     0   :  { %vm29_vm0 = vcmask 261120   ;;  %s3673_s0 = inlined_call_operand.vmem [shape: f32[2,8,32], index: 0, kind: input, shape index: {}]   ;;  %s3674_s1 = inlined_call_operand.vmem [shape: f32[24,128], index: 1, kind: input, shape index: {}]   ;;  %s3675_s2 = inlined_call_operand.vmem [shape: f32[32,768], index: 2, kind: input, shape index: {}]   ;;  %s3676_s3 = inlined_call_operand.vmem [shape: f32[344,32], index: 3, kind: input, shape index: {}]   ;;  %s3677_s4 = inlined_call_operand.hbm [shape: f32[2,8,32], index: 4, kind: output, shape index: {}]  }
   0x1   :  { %v20_v0 = vld [vmem:[%s3675_s2] sm:$0xff]  ;;  %v21_v1 = vld [vmem:[%s3675_s2 + $0x30] sm:$0xff]  ;;  %v111_v7 = vld [vmem:[%s3676_s3 + $0x108] sm:$0xff] }
   0x2   :  { %v22_v2 = vld [vmem:[%s3675_s2 + $0x60] sm:$0xff]  ;;  %v2565_v3 = vpack.c.bf16 %v21_v1, %v20_v0  ;;  %v23_v4 = vld [vmem:[%s3675_s2 + $0x90] sm:$0xff] }
   0x3   :  { %v18_v5 = vld [vmem:[%s3673_s0] sm:$0xff]  ;;  %v2569_v6 = vpack.c.bf16 %v23_v4, %v22_v2 }
   0x4   :  { %2385 = vmatprep.mubr.msk.f32.mxu0 %vm29_vm0, %v18_v5 }
   0x5   :  { %9 = vsyncpa [#allocation3], 0  ;;  %2566 = vmatprep.subr.bf16.mxu0 %v2565_v3  ;;  %s2807_s27 = smov 32   ;;  %v112_v8 = vld [vmem:[%s3676_s3 + $0x110] sm:$0x7f]  ;;  %v2865_v9 = vld [vmem:[%s3673_s0 + $0x8] sm:$0xff]  ;;  %v125_v62 = vlaneseq }
   0x6   :  { %164 = vrot.lane.b32.xlu0 %v111_v7, %s2807_s27  ;;  %2568 = vmatpush3.bf16.msra.mxu0 %v2565_v3  ;;  %v2200_v10 = vld [vmem:[%s3674_s1] ss:$0 sm:$0xff]  ;;  %v2877_v15 = vld [vmem:[%s3674_s1 + $0x13] ss:$0 sm:$0xff]  ;;  %s2808_s10 = smov 96   ;;  %v113_v17 = vld [vmem:[%s3676_s3 + $0x118] sm:$0xff] }
   0x7   :  { %2570 = vmatprep.subr.bf16.mxu0 %v2569_v6  ;;  %vm2894_vm1 = vmpackc.low %vm29_vm0, %vm29_vm0  ;;  %v2906_v28 = vld [vmem:[%s3674_s1 + $0x14] ss:$0 sm:$0xff]  ;;  %v2911_v29 = vld [vmem:[%s3674_s1 + $0x15] ss:$0 sm:$0xff]  ;;  %v2975_v63 = vshrl.u32 %v125_v62, 7  ;;  %s2809_s7 = smov 127  }
   0x8   :  { %v114_v32 = vld [vmem:[%s3676_s3 + $0x120] sm:$0xff]  ;;  %v2923_v34 = vld [vmem:[%s3674_s1 + $0x16] ss:$0 sm:$0xff]  ;;  %v115_v36 = vld [vmem:[%s3676_s3 + $0x128] sm:$0xff]  ;;  %s2810_s8 = smov 120   ;;  %s2811_s9 = smov 64  }
   0x9   :  { %v116_v40 = vld [vmem:[%s3676_s3 + $0x130] sm:$0xff]  ;;  %v117_v41 = vld [vmem:[%s3676_s3 + $0x138] sm:$0xff]  ;;  %v118_v44 = vld [vmem:[%s3676_s3 + $0x140] sm:$0xff]  ;;  %v127_v0 = vadd.s32 8, %v2975_v63  ;;  %v129_v4 = vadd.s32 24, %v2975_v63  ;;  %v2986_v5 = vand.u32 7, %v2975_v63 }
   0xa   :  { %166 = vrot.lane.b32.xlu0 %v112_v8, %s2807_s27  ;;  %2572 = vmatpush3.bf16.msra.mxu0 %v2569_v6  ;;  %v119_v45 = vld [vmem:[%s3676_s3 + $0x148] sm:$0xff]  ;;  %v120_v49 = vld [vmem:[%s3676_s3 + $0x150] sm:$0xff]  ;;  %v128_v6 = vadd.s32 16, %v2975_v63  ;;  %s2812_s19 = smov [#allocation2]  }
   0xb   :  { %v2982_v3 = vand.u32 7, %v127_v0  ;;  %vm310_vm3 = vcmp.eq.s32.totalorder %v2986_v5, 0  ;;  %vm318_vm7 = vcmp.eq.s32.totalorder %v2986_v5, 1  ;;  %vm342_vm11 = vcmp.eq.s32.totalorder %v2986_v5, 2  ;;  %s2189_s20 = sshll.u32 %s2812_s19, 4  ;;  %s2190_s20 = int_to_ptr.vmem [resolvable:$true] %s2189_s20 }
   0xc   :  { %vm366_vm15 = vcmp.eq.s32.totalorder %v2986_v5, 3  ;;  %s2783_s21 = scalar_lea.vmem %s2190_s20, 256  ;;  %p2788_p1 = scmp.lt.s32.totalorder %s2190_s20, %s2190_s20 }
   0xd   :  { %2386 = vmatmul.mubr.msk.f32.vlgmr.msra.gmra.mrb[0].mxu0 %vm29_vm0, %v2865_v9  ;;  %vm311_vm2 = vcmp.eq.s32.totalorder %v2982_v3, 0  ;;  %vm319_vm6 = vcmp.eq.s32.totalorder %v2982_v3, 1  ;;  %vm343_vm10 = vcmp.eq.s32.totalorder %v2982_v3, 2  ;;  %vm367_vm14 = vcmp.eq.s32.totalorder %v2982_v3, 3  ;;  %p2784_p0 = scmp.ne.s32.totalorder %s2190_s20, %s2783_s21  ;;  %p2789_p2 = scmp.lt.s32.totalorder %s2783_s21, %s2783_s21 }
   0xf   :  { %p2790_p3 = por %p2789_p2, %p2788_p1 }
  0x11   :  { %p2791_p4 = pnand %p2790_p3, %p2784_p0 }
  0x78   :  { %v165_v14 = vpop.permute.xlu0 %164 }
  0x7c   :  { %v167_v21 = vpop.permute.xlu0 %166 }
  0xe0   :  { %v2387_v11 = vpop.f32.mrb[0].mxu0 }
  0xe1   :  { %v2872_v12 = vadd.f32 %v2387_v11, %v2200_v10  ;;  %v102_v13 = vpop.f32.mrb[1].mxu0  ;;  %v2997_v11 = vand.u32 7, %v128_v6 }
  0xe2   :  { %v2879_v16 = vadd.f32 %v2200_v10, %v102_v13  ;;  %v2994_v10 = vand.u32 7, %v129_v4 }
  0xe3   :  { %675 = vrot.lane.b32.xlu0 %v2872_v12, %s2808_s10  ;;  %v662_v47 = vmul.f32 %v2877_v15, %v2872_v12  ;;  %v663_v50 = vmul.f32 %v2906_v28, %v2872_v12  ;;  %v664_v53 = vmul.f32 %v2911_v29, %v2872_v12  ;;  %v665_v55 = vmul.f32 %v2923_v34, %v2872_v12 }
  0xe4   :  { %v2697_v18 = vpack.i.bf16 %v165_v14, %v2879_v16  ;;  %v138_v19 = vmul.f32 %v2877_v15, %v2879_v16  ;;  %v143_v30 = vmul.f32 %v2906_v28, %v2879_v16  ;;  %v148_v33 = vmul.f32 %v2911_v29, %v2879_v16 }
  0xe5   :  { %v153_v38 = vmul.f32 %v2923_v34, %v2879_v16  ;;  %v666_v52 = vadd.f32 %v662_v47, %v113_v17  ;;  %v667_v54 = vadd.f32 %v663_v50, %v114_v32  ;;  %v668_v56 = vadd.f32 %v664_v53, %v115_v36 }
  0xe6   :  { %2698 = vrot.lane.b32.xlu1 %v2697_v18, %s2808_s10  ;;  %v154_v20 = vadd.f32 %v138_v19, %v113_v17  ;;  %v155_v37 = vadd.f32 %v143_v30, %v114_v32  ;;  %v156_v39 = vadd.f32 %v148_v33, %v115_v36  ;;  %v158_v43 = vadd.f32 %v138_v19, %v117_v41 }
  0xe7   :  { %v157_v42 = vadd.f32 %v153_v38, %v116_v40  ;;  %v159_v46 = vadd.f32 %v143_v30, %v118_v44  ;;  %v160_v48 = vadd.f32 %v148_v33, %v119_v45  ;;  %v161_v51 = vadd.f32 %v153_v38, %v120_v49 }
  0xe8   :  { %2394 = vmatprep.mubr.msk.f32.mxu1 %vm29_vm0, %v154_v20  ;;  %v669_v57 = vadd.f32 %v665_v55, %v116_v40  ;;  %v670_v58 = vadd.f32 %v662_v47, %v117_v41  ;;  %v671_v59 = vadd.f32 %v663_v50, %v118_v44  ;;  %v672_v60 = vadd.f32 %v664_v53, %v119_v45 }
  0xe9   :  { %v673_v61 = vadd.f32 %v665_v55, %v120_v49  ;;  %vm313_vm4 = vcmp.eq.s32.totalorder %v2994_v10, 0  ;;  %vm312_vm5 = vcmp.eq.s32.totalorder %v2997_v11, 0  ;;  %vm321_vm8 = vcmp.eq.s32.totalorder %v2994_v10, 1 }
  0xea   :  { %173 = vrot.lane.b32.xlu1 %v167_v21, %s2808_s10  ;;  %vm320_vm9 = vcmp.eq.s32.totalorder %v2997_v11, 1  ;;  %vm345_vm12 = vcmp.eq.s32.totalorder %v2994_v10, 2  ;;  %vm344_vm13 = vcmp.eq.s32.totalorder %v2997_v11, 2 }
 0x155   :  { %v676_v31 = vpop.permute.xlu0 %675 }
 0x158   :  { %v2699_v22 = vpop.permute.xlu1 %2698 }
 0x159   :  { %v2701_v23 = vunpack.i.h.bf16 %v2699_v22  ;;  %v2700_v24 = vunpack.i.l.bf16 %v2699_v22 }
 0x15b   :  { %v2573_v26 = vpack.c.bf16 %v2701_v23, %v2700_v24  ;;  %v2579_v35 = vpack.c.bf16 %v2701_v23, %v676_v31 }
 0x15c   :  { %v174_v27 = vpop.permute.xlu1 %173 }
 0x15d   :  { %2575 = vmatprep.subr.msk.bf16.mxu1 %vm2894_vm1, %v2573_v26 }
 0x15e   :  { %2578 = vmatpush3.bf16.xpose.msk.msra.mxu1 %vm2894_vm1, %v2573_v26 }
 0x15f   :  { %2392 = vmatprep.subr.msk.mxu1 %vm29_vm0, %v174_v27 }
 0x166   :  { %2393 = vmatpush3.xpose.msk.msra.mxu1 %vm29_vm0, %v174_v27 }
 0x167   :  { %2581 = vmatprep.subr.msk.bf16.mxu1 %vm2894_vm1, %v2579_v35 }
 0x169   :  { %2395 = vmatmul.mubr.msk.f32.vlgmr.msra.gmra.mrb[0].mxu1 %vm29_vm0, %v155_v37 }
 0x16a   :  { %2397 = vmatprep.mubr.msk.f32.mxu1 %vm29_vm0, %v156_v39  ;;  %2584 = vmatpush3.bf16.xpose.msk.msra.mxu1 %vm2894_vm1, %v2579_v35  ;;  %vm369_vm1 = vcmp.eq.s32.totalorder %v2994_v10, 3 }
 0x16b   :  { %2418 = vmatprep.subr.msk.mxu1 %vm29_vm0, %v174_v27 }
 0x16d   :  { %2398 = vmatmul.mubr.msk.f32.gmra.mrb[2].mxu1 %vm29_vm0, %v157_v42 }
 0x16e   :  { %2400 = vmatprep.mubr.msk.f32.mxu1 %vm29_vm0, %v158_v43 }
 0x171   :  { %2401 = vmatmul.mubr.msk.f32.gmra.mrb[4].mxu1 %vm29_vm0, %v159_v46 }
 0x172   :  { %2403 = vmatprep.mubr.msk.f32.mxu1 %vm29_vm0, %v160_v48  ;;  %2419 = vmatpush3.xpose.msk.msra.mxu1 %vm29_vm0, %v174_v27 }
 0x175   :  { %2404 = vmatmul.mubr.msk.f32.gmra.mrb[6].mxu1 %vm29_vm0, %v161_v51 }
 0x176   :  { %2420 = vmatprep.mubr.msk.f32.mxu1 %vm29_vm0, %v666_v52 }
 0x179   :  { %2421 = vmatmul.mubr.msk.f32.vlgmr.msra.gmra.mrb[8].mxu1 %vm29_vm0, %v667_v54 }
 0x17a   :  { %2423 = vmatprep.mubr.msk.f32.mxu1 %vm29_vm0, %v668_v56 }
 0x17d   :  { %2424 = vmatmul.mubr.msk.f32.gmra.mrb[10].mxu1 %vm29_vm0, %v669_v57 }
 0x17e   :  { %2426 = vmatprep.mubr.msk.f32.mxu1 %vm29_vm0, %v670_v58 }
 0x181   :  { %2427 = vmatmul.mubr.msk.f32.gmra.mrb[12].mxu1 %vm29_vm0, %v671_v59 }
 0x182   :  { %2429 = vmatprep.mubr.msk.f32.mxu1 %vm29_vm0, %v672_v60 }
 0x185   :  { %2430 = vmatmul.mubr.msk.f32.gmra.mrb[14].mxu1 %vm29_vm0, %v673_v61 }
 0x23c   :  { %v2978_v1 = vpop.f32.mrb[0].mxu1 }
 0x23d   :  { %v2980_v2 = vpop.f32.mrb[1].mxu1 }
 0x240   :  { %v2989_v7 = vpop.f32.mrb[2].mxu1 }
 0x241   :  { %v2991_v8 = vpop.f32.mrb[3].mxu1 }
 0x244   :  { %v2999_v13 = vpop.f32.mrb[4].mxu1 }
 0x245   :  { %v3001_v14 = vpop.f32.mrb[5].mxu1  ;;  %v315_v17 = vsel %vm311_vm2, %v2999_v13, 0.0 }
 0x246   :  { %328 = vrot.lane.b32.xlu0 %v315_v17, %s2809_s7  ;;  %v314_v18 = vsel %vm310_vm3, %v3001_v14, 0.0 }
 0x247   :  { %326 = vrot.lane.b32.xlu1 %v314_v18, %s2809_s7 }
 0x248   :  { %v3013_v19 = vpop.f32.mrb[6].mxu1 }
 0x249   :  { %v3015_v20 = vpop.f32.mrb[7].mxu1  ;;  %v317_v21 = vsel %vm313_vm4, %v3013_v19, 0.0 }
 0x24a   :  { %332 = vrot.lane.b32.xlu0 %v317_v21, %s2809_s7  ;;  %v316_v22 = vsel %vm312_vm5, %v3015_v20, 0.0 }
 0x24b   :  { %330 = vrot.lane.b32.xlu1 %v316_v22, %s2809_s7 }
 0x24c   :  { %v3025_v23 = vpop.f32.mrb[8].mxu1 }
 0x24d   :  { %v3027_v24 = vpop.f32.mrb[9].mxu1 }
 0x250   :  { %v3029_v25 = vpop.f32.mrb[10].mxu1 }
 0x251   :  { %v3031_v26 = vpop.f32.mrb[11].mxu1 }
 0x254   :  { %v3033_v27 = vpop.f32.mrb[12].mxu1 }
 0x255   :  { %v3035_v30 = vpop.f32.mrb[13].mxu1  ;;  %v809_v31 = vsel %vm311_vm2, %v3033_v27, 0.0  ;;  %vm368_vm2 = vcmp.eq.s32.totalorder %v2997_v11, 3 }
 0x256   :  { %818 = vrot.lane.b32.xlu0 %v809_v31, %s2809_s7  ;;  %v808_v32 = vsel %vm310_vm3, %v3035_v30, 0.0  ;;  %vm391_vm3 = vcmp.eq.s32.totalorder %v2982_v3, 4 }
 0x257   :  { %816 = vrot.lane.b32.xlu1 %v808_v32, %s2809_s7 }
 0x258   :  { %v3045_v33 = vpop.f32.mrb[14].mxu1 }
 0x259   :  { %v3047_v35 = vpop.f32.mrb[15].mxu1  ;;  %v811_v36 = vsel %vm313_vm4, %v3045_v33, 0.0  ;;  %vm390_vm4 = vcmp.eq.s32.totalorder %v2986_v5, 4 }
 0x25a   :  { %822 = vrot.lane.b32.xlu0 %v811_v36, %s2809_s7  ;;  %v810_v37 = vsel %vm312_vm5, %v3047_v35, 0.0  ;;  %vm393_vm5 = vcmp.eq.s32.totalorder %v2994_v10, 4 }
 0x25b   :  { %820 = vrot.lane.b32.xlu1 %v810_v37, %s2809_s7 }
 0x2b8   :  { %v329_v38 = vpop.permute.xlu0 %328 }
 0x2b9   :  { %v327_v39 = vpop.permute.xlu1 %326  ;;  %v339_v40 = vsel %vm319_vm6, %v2999_v13, %v329_v38 }
 0x2ba   :  { %352 = vrot.lane.b32.xlu0 %v339_v40, %s2809_s7  ;;  %v338_v41 = vsel %vm318_vm7, %v3001_v14, %v327_v39 }
 0x2bb   :  { %350 = vrot.lane.b32.xlu1 %v338_v41, %s2809_s7 }
 0x2bc   :  { %v333_v42 = vpop.permute.xlu0 %332 }
 0x2bd   :  { %v331_v43 = vpop.permute.xlu1 %330  ;;  %v341_v44 = vsel %vm321_vm8, %v3013_v19, %v333_v42 }
 0x2be   :  { %356 = vrot.lane.b32.xlu0 %v341_v44, %s2809_s7  ;;  %v340_v45 = vsel %vm320_vm9, %v3015_v20, %v331_v43 }
 0x2bf   :  { %354 = vrot.lane.b32.xlu1 %v340_v45, %s2809_s7 }
 0x2c8   :  { %v819_v46 = vpop.permute.xlu0 %818 }
 0x2c9   :  { %v817_v47 = vpop.permute.xlu1 %816  ;;  %v829_v48 = vsel %vm319_vm6, %v3033_v27, %v819_v46  ;;  %vm392_vm6 = vcmp.eq.s32.totalorder %v2997_v11, 4 }
 0x2ca   :  { %838 = vrot.lane.b32.xlu0 %v829_v48, %s2809_s7  ;;  %v828_v49 = vsel %vm318_vm7, %v3035_v30, %v817_v47  ;;  %vm415_vm7 = vcmp.eq.s32.totalorder %v2982_v3, 5 }
 0x2cb   :  { %836 = vrot.lane.b32.xlu1 %v828_v49, %s2809_s7 }
 0x2cc   :  { %v823_v50 = vpop.permute.xlu0 %822 }
 0x2cd   :  { %v821_v51 = vpop.permute.xlu1 %820  ;;  %v831_v52 = vsel %vm321_vm8, %v3045_v33, %v823_v50  ;;  %vm414_vm8 = vcmp.eq.s32.totalorder %v2986_v5, 5 }
 0x2ce   :  { %842 = vrot.lane.b32.xlu0 %v831_v52, %s2809_s7  ;;  %v830_v53 = vsel %vm320_vm9, %v3047_v35, %v821_v51  ;;  %vm417_vm9 = vcmp.eq.s32.totalorder %v2994_v10, 5 }
 0x2cf   :  { %840 = vrot.lane.b32.xlu1 %v830_v53, %s2809_s7 }
 0x32c   :  { %v353_v54 = vpop.permute.xlu0 %352 }
 0x32d   :  { %v351_v55 = vpop.permute.xlu1 %350  ;;  %v363_v56 = vsel %vm343_vm10, %v2999_v13, %v353_v54 }
 0x32e   :  { %376 = vrot.lane.b32.xlu0 %v363_v56, %s2809_s7  ;;  %v362_v57 = vsel %vm342_vm11, %v3001_v14, %v351_v55 }
 0x32f   :  { %374 = vrot.lane.b32.xlu1 %v362_v57, %s2809_s7 }
 0x330   :  { %v357_v58 = vpop.permute.xlu0 %356 }
 0x331   :  { %v355_v59 = vpop.permute.xlu1 %354  ;;  %v365_v60 = vsel %vm345_vm12, %v3013_v19, %v357_v58 }
 0x332   :  { %380 = vrot.lane.b32.xlu0 %v365_v60, %s2809_s7  ;;  %v364_v61 = vsel %vm344_vm13, %v3015_v20, %v355_v59 }
 0x333   :  { %378 = vrot.lane.b32.xlu1 %v364_v61, %s2809_s7 }
 0x33c   :  { %v839_v62 = vpop.permute.xlu0 %838 }
 0x33d   :  { %v837_v0 = vpop.permute.xlu1 %836  ;;  %v849_v4 = vsel %vm343_vm10, %v3033_v27, %v839_v62  ;;  %vm416_vm10 = vcmp.eq.s32.totalorder %v2997_v11, 5 }
 0x33e   :  { %858 = vrot.lane.b32.xlu0 %v849_v4, %s2809_s7  ;;  %v848_v6 = vsel %vm342_vm11, %v3035_v30, %v837_v0  ;;  %vm439_vm11 = vcmp.eq.s32.totalorder %v2982_v3, 6 }
 0x33f   :  { %856 = vrot.lane.b32.xlu1 %v848_v6, %s2809_s7 }
 0x340   :  { %v843_v17 = vpop.permute.xlu0 %842 }
 0x341   :  { %v841_v18 = vpop.permute.xlu1 %840  ;;  %v851_v21 = vsel %vm345_vm12, %v3045_v33, %v843_v17  ;;  %vm438_vm12 = vcmp.eq.s32.totalorder %v2986_v5, 6 }
 0x342   :  { %862 = vrot.lane.b32.xlu0 %v851_v21, %s2809_s7  ;;  %v850_v22 = vsel %vm344_vm13, %v3047_v35, %v841_v18  ;;  %vm441_vm13 = vcmp.eq.s32.totalorder %v2994_v10, 6 }
 0x343   :  { %860 = vrot.lane.b32.xlu1 %v850_v22, %s2809_s7 }
 0x3a0   :  { %v377_v31 = vpop.permute.xlu0 %376 }
 0x3a1   :  { %v375_v32 = vpop.permute.xlu1 %374  ;;  %v387_v36 = vsel %vm367_vm14, %v2999_v13, %v377_v31 }
 0x3a2   :  { %400 = vrot.lane.b32.xlu0 %v387_v36, %s2809_s7  ;;  %v386_v37 = vsel %vm366_vm15, %v3001_v14, %v375_v32 }
 0x3a3   :  { %398 = vrot.lane.b32.xlu1 %v386_v37, %s2809_s7 }
 0x3a4   :  { %v381_v38 = vpop.permute.xlu0 %380 }
 0x3a5   :  { %v379_v39 = vpop.permute.xlu1 %378  ;;  %v389_v40 = vsel %vm369_vm1, %v3013_v19, %v381_v38 }
 0x3a6   :  { %404 = vrot.lane.b32.xlu0 %v389_v40, %s2809_s7  ;;  %v388_v41 = vsel %vm368_vm2, %v3015_v20, %v379_v39 }
 0x3a7   :  { %402 = vrot.lane.b32.xlu1 %v388_v41, %s2809_s7 }
 0x3b0   :  { %v859_v42 = vpop.permute.xlu0 %858 }
 0x3b1   :  { %v857_v43 = vpop.permute.xlu1 %856  ;;  %v869_v44 = vsel %vm367_vm14, %v3033_v27, %v859_v42  ;;  %vm440_vm14 = vcmp.eq.s32.totalorder %v2997_v11, 6 }
 0x3b2   :  { %878 = vrot.lane.b32.xlu0 %v869_v44, %s2809_s7  ;;  %v868_v45 = vsel %vm366_vm15, %v3035_v30, %v857_v43  ;;  %vm463_vm15 = vcmp.eq.s32.totalorder %v2982_v3, 7 }
 0x3b3   :  { %876 = vrot.lane.b32.xlu1 %v868_v45, %s2809_s7 }
 0x3b4   :  { %v863_v46 = vpop.permute.xlu0 %862 }
 0x3b5   :  { %v861_v47 = vpop.permute.xlu1 %860  ;;  %v871_v48 = vsel %vm369_vm1, %v3045_v33, %v863_v46  ;;  %vm462_vm1 = vcmp.eq.s32.totalorder %v2986_v5, 7 }
 0x3b6   :  { %882 = vrot.lane.b32.xlu0 %v871_v48, %s2809_s7  ;;  %v870_v49 = vsel %vm368_vm2, %v3047_v35, %v861_v47  ;;  %vm465_vm2 = vcmp.eq.s32.totalorder %v2994_v10, 7 }
 0x3b7   :  { %880 = vrot.lane.b32.xlu1 %v870_v49, %s2809_s7 }
 0x414   :  { %v401_v50 = vpop.permute.xlu0 %400 }
 0x415   :  { %v399_v51 = vpop.permute.xlu1 %398  ;;  %v411_v52 = vsel %vm391_vm3, %v2999_v13, %v401_v50 }
 0x416   :  { %424 = vrot.lane.b32.xlu0 %v411_v52, %s2809_s7  ;;  %v410_v53 = vsel %vm390_vm4, %v3001_v14, %v399_v51 }
 0x417   :  { %422 = vrot.lane.b32.xlu1 %v410_v53, %s2809_s7 }
 0x418   :  { %v405_v54 = vpop.permute.xlu0 %404 }
 0x419   :  { %v403_v55 = vpop.permute.xlu1 %402  ;;  %v413_v56 = vsel %vm393_vm5, %v3013_v19, %v405_v54 }
 0x41a   :  { %428 = vrot.lane.b32.xlu0 %v413_v56, %s2809_s7  ;;  %v412_v57 = vsel %vm392_vm6, %v3015_v20, %v403_v55 }
 0x41b   :  { %426 = vrot.lane.b32.xlu1 %v412_v57, %s2809_s7 }
 0x424   :  { %v879_v58 = vpop.permute.xlu0 %878 }
 0x425   :  { %v877_v59 = vpop.permute.xlu1 %876  ;;  %v889_v60 = vsel %vm391_vm3, %v3033_v27, %v879_v58  ;;  %vm464_vm3 = vcmp.eq.s32.totalorder %v2997_v11, 7 }
 0x426   :  { %898 = vrot.lane.b32.xlu0 %v889_v60, %s2809_s7  ;;  %v888_v61 = vsel %vm390_vm4, %v3035_v30, %v877_v59  ;;  %vm510_vm4 = vcmask 64512  }
 0x427   :  { %896 = vrot.lane.b32.xlu1 %v888_v61, %s2809_s7 }
 0x428   :  { %v883_v62 = vpop.permute.xlu0 %882 }
 0x429   :  { %v881_v0 = vpop.permute.xlu1 %880  ;;  %v891_v4 = vsel %vm393_vm5, %v3045_v33, %v883_v62  ;;  %vm1620_vm5 = vcmask 1042432  }
 0x42a   :  { %902 = vrot.lane.b32.xlu0 %v891_v4, %s2809_s7  ;;  %v890_v6 = vsel %vm392_vm6, %v3047_v35, %v881_v0  ;;  %vm1636_vm6 = vcmask 1046528  }
 0x42b   :  { %900 = vrot.lane.b32.xlu1 %v890_v6, %s2809_s7 }
 0x488   :  { %v425_v17 = vpop.permute.xlu0 %424 }
 0x489   :  { %v423_v18 = vpop.permute.xlu1 %422  ;;  %v435_v21 = vsel %vm415_vm7, %v2999_v13, %v425_v17 }
 0x48a   :  { %448 = vrot.lane.b32.xlu0 %v435_v21, %s2809_s7  ;;  %v434_v22 = vsel %vm414_vm8, %v3001_v14, %v423_v18 }
 0x48b   :  { %446 = vrot.lane.b32.xlu1 %v434_v22, %s2809_s7 }
 0x48c   :  { %v429_v31 = vpop.permute.xlu0 %428 }
 0x48d   :  { %v427_v32 = vpop.permute.xlu1 %426  ;;  %v437_v36 = vsel %vm417_vm9, %v3013_v19, %v429_v31 }
 0x48e   :  { %452 = vrot.lane.b32.xlu0 %v437_v36, %s2809_s7  ;;  %v436_v37 = vsel %vm416_vm10, %v3015_v20, %v427_v32 }
 0x48f   :  { %450 = vrot.lane.b32.xlu1 %v436_v37, %s2809_s7 }
 0x498   :  { %v899_v38 = vpop.permute.xlu0 %898 }
 0x499   :  { %v897_v39 = vpop.permute.xlu1 %896  ;;  %v909_v40 = vsel %vm415_vm7, %v3033_v27, %v899_v38  ;;  %vm1650_vm7 = vcmask 1045504  }
 0x49a   :  { %918 = vrot.lane.b32.xlu0 %v909_v40, %s2809_s7  ;;  %v908_v41 = vsel %vm414_vm8, %v3035_v30, %v897_v39  ;;  %vm1664_vm8 = vcmask 1044480  }
 0x49b   :  { %916 = vrot.lane.b32.xlu1 %v908_v41, %s2809_s7 }
 0x49c   :  { %v903_v42 = vpop.permute.xlu0 %902 }
 0x49d   :  { %v901_v43 = vpop.permute.xlu1 %900  ;;  %v911_v44 = vsel %vm417_vm9, %v3045_v33, %v903_v42  ;;  %vm1678_vm9 = vcmask 1043456  }
 0x49e   :  { %922 = vrot.lane.b32.xlu0 %v911_v44, %s2809_s7  ;;  %v910_v45 = vsel %vm416_vm10, %v3047_v35, %v901_v43  ;;  %vm1705_vm10 = vcmask 1041408  }
 0x49f   :  { %920 = vrot.lane.b32.xlu1 %v910_v45, %s2809_s7 }
 0x4fc   :  { %v449_v46 = vpop.permute.xlu0 %448 }
 0x4fd   :  { %v447_v47 = vpop.permute.xlu1 %446  ;;  %v459_v48 = vsel %vm439_vm11, %v2999_v13, %v449_v46 }
 0x4fe   :  { %472 = vrot.lane.b32.xlu0 %v459_v48, %s2809_s7  ;;  %v458_v49 = vsel %vm438_vm12, %v3001_v14, %v447_v47 }
 0x4ff   :  { %470 = vrot.lane.b32.xlu1 %v458_v49, %s2809_s7 }
 0x500   :  { %v453_v50 = vpop.permute.xlu0 %452 }
 0x501   :  { %v451_v51 = vpop.permute.xlu1 %450  ;;  %v461_v52 = vsel %vm441_vm13, %v3013_v19, %v453_v50 }
 0x502   :  { %476 = vrot.lane.b32.xlu0 %v461_v52, %s2809_s7  ;;  %v460_v53 = vsel %vm440_vm14, %v3015_v20, %v451_v51 }
 0x503   :  { %474 = vrot.lane.b32.xlu1 %v460_v53, %s2809_s7 }
 0x50c   :  { %v919_v54 = vpop.permute.xlu0 %918 }
 0x50d   :  { %v917_v55 = vpop.permute.xlu1 %916  ;;  %v929_v56 = vsel %vm439_vm11, %v3033_v27, %v919_v54 }
 0x50e   :  { %938 = vrot.lane.b32.xlu0 %v929_v56, %s2809_s7  ;;  %v928_v57 = vsel %vm438_vm12, %v3035_v30, %v917_v55 }
 0x50f   :  { %936 = vrot.lane.b32.xlu1 %v928_v57, %s2809_s7 }
 0x510   :  { %v923_v58 = vpop.permute.xlu0 %922 }
 0x511   :  { %v921_v59 = vpop.permute.xlu1 %920  ;;  %v931_v60 = vsel %vm441_vm13, %v3045_v33, %v923_v58 }
 0x512   :  { %942 = vrot.lane.b32.xlu0 %v931_v60, %s2809_s7  ;;  %v930_v61 = vsel %vm440_vm14, %v3047_v35, %v921_v59 }
 0x513   :  { %940 = vrot.lane.b32.xlu1 %v930_v61, %s2809_s7 }
 0x570   :  { %v473_v62 = vpop.permute.xlu0 %472 }
 0x571   :  { %v471_v0 = vpop.permute.xlu1 %470  ;;  %v483_v4 = vsel %vm463_vm15, %v2999_v13, %v473_v62 }
 0x572   :  { %492 = vrot.lane.b32.xlu0 %v483_v4, %s2810_s8  ;;  %v482_v6 = vsel %vm462_vm1, %v3001_v14, %v471_v0 }
 0x573   :  { %490 = vrot.lane.b32.xlu1 %v482_v6, %s2810_s8 }
 0x574   :  { %v477_v17 = vpop.permute.xlu0 %476 }
 0x575   :  { %v475_v18 = vpop.permute.xlu1 %474  ;;  %v485_v21 = vsel %vm465_vm2, %v3013_v19, %v477_v17 }
 0x576   :  { %496 = vrot.lane.b32.xlu0 %v485_v21, %s2810_s8  ;;  %v484_v13 = vsel %vm464_vm3, %v3015_v20, %v475_v18 }
 0x577   :  { %494 = vrot.lane.b32.xlu1 %v484_v13, %s2810_s8 }
 0x580   :  { %v939_v22 = vpop.permute.xlu0 %938 }
 0x581   :  { %v937_v31 = vpop.permute.xlu1 %936  ;;  %v949_v14 = vsel %vm463_vm15, %v3033_v27, %v939_v22 }
 0x582   :  { %958 = vrot.lane.b32.xlu0 %v949_v14, %s2810_s8  ;;  %v948_v32 = vsel %vm462_vm1, %v3035_v30, %v937_v31 }
 0x583   :  { %956 = vrot.lane.b32.xlu1 %v948_v32, %s2810_s8 }
 0x584   :  { %v943_v36 = vpop.permute.xlu0 %942 }
 0x585   :  { %v941_v19 = vpop.permute.xlu1 %940  ;;  %v951_v37 = vsel %vm465_vm2, %v3045_v33, %v943_v36 }
 0x586   :  { %962 = vrot.lane.b32.xlu0 %v951_v37, %s2810_s8  ;;  %v950_v20 = vsel %vm464_vm3, %v3047_v35, %v941_v19 }
 0x587   :  { %960 = vrot.lane.b32.xlu1 %v950_v20, %s2810_s8 }
 0x5e4   :  { %v493_v3 = vpop.permute.xlu0 %492 }
 0x5e5   :  { %v503_v27 = vadd.f32 %v2978_v1, %v493_v3  ;;  %v491_v38 = vpop.permute.xlu1 %490 }
 0x5e6   :  { %v502_v5 = vadd.f32 %v491_v38, %v2980_v2 }
 0x5e7   :  { %v507_v30 = vmul.f32 0.35355338, %v503_v27 }
 0x5e8   :  { %v506_v39 = vmul.f32 0.35355338, %v502_v5  ;;  %v497_v40 = vpop.permute.xlu0 %496 }
 0x5e9   :  { %v505_v41 = vadd.f32 %v2989_v7, %v497_v40  ;;  %v495_v10 = vpop.permute.xlu1 %494  ;;  %v514_v33 = vsel %vm510_vm4, %v507_v30, -inf }
 0x5ea   :  { %v504_v42 = vadd.f32 %v495_v10, %v2991_v8  ;;  %515 = vmax.xlane.f32.xlu0 %v514_v33  ;;  %v511_v11 = vsel %vm510_vm4, %v506_v39, -inf }
 0x5eb   :  { %v509_v35 = vmul.f32 0.35355338, %v505_v41  ;;  %512 = vmax.xlane.f32.xlu1 %v511_v11 }
 0x5ec   :  { %v508_v1 = vmul.f32 0.35355338, %v504_v42 }
 0x5ed   :  { %v520_v43 = vsel %vm510_vm4, %v509_v35, -inf }
 0x5ee   :  { %v517_v2 = vsel %vm510_vm4, %v508_v1, -inf }
 0x5ef   :  { %521 = vmax.xlane.f32.xlu1 %v520_v43  ;;  %518 = vmax.xlane.f32.xlu0 %v517_v2 }
 0x5f4   :  { %v959_v44 = vpop.permute.xlu0 %958 }
 0x5f5   :  { %v969_v7 = vadd.f32 %v3025_v23, %v959_v44  ;;  %v957_v45 = vpop.permute.xlu1 %956 }
 0x5f6   :  { %v968_v46 = vadd.f32 %v957_v45, %v3027_v24 }
 0x5f7   :  { %v973_v47 = vmul.f32 0.35355338, %v969_v7 }
 0x5f8   :  { %v972_v8 = vmul.f32 0.35355338, %v968_v46  ;;  %v963_v48 = vpop.permute.xlu0 %962 }
 0x5f9   :  { %v971_v49 = vadd.f32 %v3029_v25, %v963_v48  ;;  %v961_v50 = vpop.permute.xlu1 %960  ;;  %v979_v51 = vsel %vm510_vm4, %v973_v47, -inf }
 0x5fa   :  { %v970_v52 = vadd.f32 %v961_v50, %v3031_v26  ;;  %980 = vmax.xlane.f32.xlu1 %v979_v51  ;;  %v976_v53 = vsel %vm510_vm4, %v972_v8, -inf }
 0x5fb   :  { %v975_v54 = vmul.f32 0.35355338, %v971_v49  ;;  %977 = vmax.xlane.f32.xlu0 %v976_v53 }
 0x5fc   :  { %v974_v55 = vmul.f32 0.35355338, %v970_v52 }
 0x5fd   :  { %v985_v23 = vsel %vm510_vm4, %v975_v54, -inf }
 0x5fe   :  { %986 = vmax.xlane.f32.xlu1 %v985_v23  ;;  %v982_v24 = vsel %vm510_vm4, %v974_v55, -inf }
 0x5ff   :  { %983 = vmax.xlane.f32.xlu0 %v982_v24 }
 0x677   :  { %v516_v56 = vpop.xlane.xlu0 %515 }
 0x678   :  { %v524_v57 = vsub.f32 %v507_v30, %v516_v56  ;;  %v513_v25 = vpop.xlane.xlu1 %512 }
 0x679   :  { %v523_v58 = vsub.f32 %v506_v39, %v513_v25 }
 0x67a   :  { %v529_v59 = vmul.f32 1.442695, %v524_v57 }
 0x67b   :  { %v527_v60 = vmul.f32 1.442695, %v523_v58 }
 0x67c   :  { %2702 = vpow2.f32 %v529_v59  ;;  %v519_v26 = vpop.xlane.xlu0 %518  ;;  %v522_v61 = vpop.xlane.xlu1 %521 }
 0x67d   :  { %2704 = vpow2.f32 %v527_v60  ;;  %v525_v62 = vsub.f32 %v508_v1, %v519_v26  ;;  %v526_v0 = vsub.f32 %v509_v35, %v522_v61 }
 0x67f   :  { %v531_v4 = vmul.f32 1.442695, %v525_v62  ;;  %v533_v6 = vmul.f32 1.442695, %v526_v0  ;;  %v1127_v62 = vld [vmem:[%s3675_s2 + $0x10] sm:$0xff]  ;;  %v1128_v0 = vld [vmem:[%s3675_s2 + $0x40] sm:$0xff] }
 0x681   :  { %2706 = vpow2.f32 %v531_v4  ;;  %v2585_v4 = vpack.c.bf16 %v1128_v0, %v1127_v62 }
 0x682   :  { %2708 = vpow2.f32 %v533_v6  ;;  %v1129_v6 = vld [vmem:[%s3675_s2 + $0x70] sm:$0xff] }
 0x686   :  { %v3317_v17 = vpop.eup %2702 }
 0x687   :  { %v2705_v18 = vpop.eup %2704  ;;  %v981_v21 = vpop.xlane.xlu1 %980  ;;  %v538_v13 = vsel %vm510_vm4, %v3317_v17, 0.0 }
 0x688   :  { %v989_v22 = vsub.f32 %v973_v47, %v981_v21  ;;  %539 = vadd.xlane.f32.xlu1 %v538_v13  ;;  %v978_v31 = vpop.xlane.xlu0 %977  ;;  %v535_v14 = vsel %vm510_vm4, %v2705_v18, 0.0 }
 0x689   :  { %v988_v32 = vsub.f32 %v972_v8, %v978_v31  ;;  %536 = vadd.xlane.f32.xlu0 %v535_v14 }
 0x68a   :  { %v994_v36 = vmul.f32 1.442695, %v989_v22 }
 0x68b   :  { %v2707_v19 = vpop.eup %2706  ;;  %v992_v37 = vmul.f32 1.442695, %v988_v32  ;;  %v987_v20 = vpop.xlane.xlu1 %986 }
 0x68c   :  { %v3322_v3 = vpop.eup %2708  ;;  %2710 = vpow2.f32 %v994_v36  ;;  %v991_v27 = vsub.f32 %v975_v54, %v987_v20  ;;  %v984_v38 = vpop.xlane.xlu0 %983  ;;  %v541_v5 = vsel %vm510_vm4, %v2707_v19, 0.0 }
 0x68d   :  { %2712 = vpow2.f32 %v992_v37  ;;  %v990_v30 = vsub.f32 %v974_v55, %v984_v38  ;;  %542 = vadd.xlane.f32.xlu0 %v541_v5  ;;  %v544_v39 = vsel %vm510_vm4, %v3322_v3, 0.0 }
 0x68e   :  { %v998_v40 = vmul.f32 1.442695, %v991_v27  ;;  %545 = vadd.xlane.f32.xlu1 %v544_v39 }
 0x68f   :  { %v996_v41 = vmul.f32 1.442695, %v990_v30 }
 0x690   :  { %2714 = vpow2.f32 %v998_v40 }
 0x691   :  { %2716 = vpow2.f32 %v996_v41 }
 0x696   :  { %v2711_v10 = vpop.eup %2710 }
 0x697   :  { %v2713_v33 = vpop.eup %2712  ;;  %v1003_v42 = vsel %vm510_vm4, %v2711_v10, 0.0 }
 0x698   :  { %1004 = vadd.xlane.f32.xlu1 %v1003_v42  ;;  %v1000_v11 = vsel %vm510_vm4, %v2713_v33, 0.0 }
 0x699   :  { %1001 = vadd.xlane.f32.xlu0 %v1000_v11 }
 0x69a   :  { %v2715_v35 = vpop.eup %2714 }
 0x69b   :  { %v2717_v1 = vpop.eup %2716  ;;  %v1009_v43 = vsel %vm510_vm4, %v2715_v35, 0.0 }
 0x69c   :  { %1010 = vadd.xlane.f32.xlu1 %v1009_v43  ;;  %v1006_v2 = vsel %vm510_vm4, %v2717_v1, 0.0 }
 0x69d   :  { %1007 = vadd.xlane.f32.xlu0 %v1006_v2 }
 0x6ad   :  { %1020 = vrot.lane.b32.xlu1 %v2872_v12, %s2811_s9 }
 0x6b3   :  { %555 = vrot.lane.b32.xlu0 %v2879_v16, %s2811_s9 }
 0x715   :  { %v540_v7 = vpop.xlane.xlu1 %539 }
 0x716   :  { %v537_v44 = vpop.xlane.xlu0 %536 }
 0x717   :  { %2718 = vrcp.f32 %v537_v44 }
 0x718   :  { %2720 = vrcp.f32 %v540_v7 }
 0x71a   :  { %v543_v45 = vpop.xlane.xlu0 %542 }
 0x71b   :  { %v546_v47 = vpop.xlane.xlu1 %545  ;;  %2722 = vrcp.f32 %v543_v45 }
 0x71c   :  { %2724 = vrcp.f32 %v546_v47 }
 0x721   :  { %v2719_v46 = vpop.eup %2718 }
 0x722   :  { %v551_v8 = vmul.f32 %v2719_v46, %v2705_v18  ;;  %v2721_v16 = vpop.eup %2720 }
 0x723   :  { %v552_v55 = vmul.f32 %v2721_v16, %v3317_v17  ;;  %v1130_v17 = vld [vmem:[%s3675_s2 + $0xa0] sm:$0xff] }
 0x724   :  { %2408 = vmatprep.mubr.msk.f32.mxu0 %vm510_vm4, %v551_v8  ;;  %v2589_v18 = vpack.c.bf16 %v1130_v17, %v1129_v6 }
 0x725   :  { %v1005_v48 = vpop.xlane.xlu1 %1004  ;;  %v2723_v51 = vpop.eup %2722 }
 0x726   :  { %2726 = vrcp.f32 %v1005_v48  ;;  %v1002_v49 = vpop.xlane.xlu0 %1001  ;;  %v2725_v54 = vpop.eup %2724  ;;  %v553_v24 = vmul.f32 %v2723_v51, %v2707_v19  ;;  %v1262_v51 = vld [vmem:[%s3675_s2 + $0x20] sm:$0xff] }
 0x727   :  { %2728 = vrcp.f32 %v1002_v49  ;;  %v554_v58 = vmul.f32 %v2725_v54, %v3322_v3 }
 0x729   :  { %v1011_v50 = vpop.xlane.xlu1 %1010 }
 0x72a   :  { %2730 = vrcp.f32 %v1011_v50  ;;  %v1008_v12 = vpop.xlane.xlu0 %1007 }
 0x72b   :  { %2732 = vrcp.f32 %v1008_v12 }
 0x72d   :  { %v1021_v52 = vpop.permute.xlu1 %1020 }
 0x72e   :  { %v556_v53 = vpop.permute.xlu0 %555  ;;  %2432 = vmatprep.subr.mxu1 %v1021_v52 }
 0x72f   :  { %2406 = vmatprep.subr.mxu0 %v556_v53  ;;  %2433 = vmatpush3.msra.mxu1 %v1021_v52  ;;  %v1263_v52 = vld [vmem:[%s3675_s2 + $0x50] sm:$0xff] }
 0x730   :  { %v2727_v23 = vpop.eup %2726  ;;  %2407 = vmatpush3.msra.mxu0 %v556_v53  ;;  %2586 = vmatprep.subr.bf16.mxu1 %v2585_v4  ;;  %v1264_v53 = vld [vmem:[%s3675_s2 + $0x80] sm:$0xff]  ;;  %v2593_v54 = vpack.c.bf16 %v1263_v52, %v1262_v51 }
 0x731   :  { %v2729_v56 = vpop.eup %2728  ;;  %2409 = vmatmul.mubr.msk.f32.vlgmr.msra.gmra.mrb[2].mxu0 %vm510_vm4, %v552_v55  ;;  %v1017_v25 = vmul.f32 %v2727_v23, %v2711_v10  ;;  %v1265_v55 = vld [vmem:[%s3675_s2 + $0xb0] sm:$0xff] }
 0x732   :  { %2411 = vmatprep.mubr.msk.f32.mxu0 %vm510_vm4, %v553_v24  ;;  %v1016_v57 = vmul.f32 %v2729_v56, %v2713_v33  ;;  %v2597_v23 = vpack.c.bf16 %v1265_v55, %v1264_v53  ;;  %2594 = vmatprep.subr.bf16.mxu0 %v2593_v54 }
 0x733   :  { %2596 = vmatpush3.bf16.msra.mxu0 %v2593_v54 }
 0x734   :  { %v2731_v59 = vpop.eup %2730  ;;  %2434 = vmatprep.mubr.msk.f32.mxu1 %vm510_vm4, %v1016_v57  ;;  %2598 = vmatprep.subr.bf16.mxu0 %v2597_v23 }
 0x735   :  { %v2733_v60 = vpop.eup %2732  ;;  %2412 = vmatmul.mubr.msk.f32.gmra.mrb[4].mxu0 %vm510_vm4, %v554_v58  ;;  %2435 = vmatmul.mubr.msk.f32.vlgmr.msra.gmra.mrb[16].mxu1 %vm510_vm4, %v1017_v25  ;;  %v1019_v61 = vmul.f32 %v2731_v59, %v2715_v35 }
 0x736   :  { %v1018_v26 = vmul.f32 %v2733_v60, %v2717_v1  ;;  %2588 = vmatpush3.bf16.msra.mxu1 %v2585_v4  ;;  %v2241_v4 = vld [vmem:[%s3674_s1 + $0x3] ss:$0 sm:$0xff] }
 0x737   :  { %2590 = vmatprep.subr.bf16.mxu1 %v2589_v18  ;;  %2600 = vmatpush3.bf16.msra.mxu0 %v2597_v23 }
 0x738   :  { %2437 = vmatprep.mubr.msk.f32.mxu1 %vm510_vm4, %v1018_v26  ;;  %v2240_v26 = vld [vmem:[%s3674_s1 + $0x2] ss:$0 sm:$0xff] }
 0x739   :  { %2438 = vmatmul.mubr.msk.f32.gmra.mrb[18].mxu1 %vm510_vm4, %v1019_v61 }
 0x73a   :  { %2592 = vmatpush3.bf16.msra.mxu1 %v2589_v18 }
 0x804   :  { %v2410_v21 = vpop.f32.mrb[2].mxu0 }
 0x805   :  { %v656_v13 = vmul.f32 %v2410_v21, %v2906_v28  ;;  %v636_v22 = vpop.f32.mrb[3].mxu0 }
 0x806   :  { %v655_v31 = vmul.f32 %v2877_v15, %v636_v22  ;;  %v1367_v22 = vld [vmem:[%s3676_s3 + $0x8] sm:$0xff] }
 0x808   :  { %v657_v14 = vadd.f32 %v656_v13, %v655_v31  ;;  %v2413_v32 = vpop.f32.mrb[4].mxu0  ;;  %v2436_v36 = vpop.f32.mrb[16].mxu1  ;;  %v1366_v13 = vld [vmem:[%s3676_s3] sm:$0xff] }
 0x809   :  { %v1121_v19 = vmul.f32 %v2436_v36, %v2906_v28  ;;  %v646_v37 = vpop.f32.mrb[5].mxu0  ;;  %v1101_v20 = vpop.f32.mrb[17].mxu1  ;;  %v660_v38 = vmul.f32 %v2413_v32, %v2923_v34  ;;  %v2601_v31 = vpack.c.bf16 %v1367_v22, %v1366_v13  ;;  %v1369_v32 = vld [vmem:[%s3676_s3 + $0x18] sm:$0xff] }
 0x80a   :  { %v658_v3 = vmul.f32 %v2911_v29, %v646_v37  ;;  %v1120_v27 = vmul.f32 %v2877_v15, %v1101_v20  ;;  %v2239_v15 = vld [vmem:[%s3674_s1 + $0x1] ss:$0 sm:$0xff]  ;;  %v1371_v37 = vld [vmem:[%s3676_s3 + $0x28] sm:$0xff] }
 0x80b   :  { %2602 = vmatprep.subr.bf16.mxu1 %v2601_v31 }
 0x80c   :  { %v659_v5 = vadd.f32 %v658_v3, %v657_v14  ;;  %v1122_v30 = vadd.f32 %v1121_v19, %v1120_v27  ;;  %v2439_v39 = vpop.f32.mrb[18].mxu1  ;;  %v1368_v14 = vld [vmem:[%s3676_s3 + $0x10] sm:$0xff]  ;;  %v1370_v19 = vld [vmem:[%s3676_s3 + $0x20] sm:$0xff]  ;;  %v1373_v27 = vld [vmem:[%s3676_s3 + $0x38] sm:$0xff] }
 0x80d   :  { %v1111_v40 = vpop.f32.mrb[19].mxu1  ;;  %v1125_v33 = vmul.f32 %v2439_v39, %v2923_v34  ;;  %v2605_v36 = vpack.c.bf16 %v1369_v32, %v1368_v14  ;;  %v2609_v20 = vpack.c.bf16 %v1371_v37, %v1370_v19  ;;  %v1372_v3 = vld [vmem:[%s3676_s3 + $0x30] sm:$0xff] }
 0x80e   :  { %v661_v41 = vadd.f32 %v660_v38, %v659_v5  ;;  %v1123_v10 = vmul.f32 %v2911_v29, %v1111_v40  ;;  %v2782_v29 = vld [vmem:[%s3673_s0] sm:$0xff]  ;;  %v2613_v38 = vpack.c.bf16 %v1373_v27, %v1372_v3  ;;  %v1376_v40 = vld [vmem:[%s3676_s3 + $0x50] sm:$0xff] }
 0x80f   :  { %v1374_v5 = vld [vmem:[%s3676_s3 + $0x40] sm:$0xff] }
 0x810   :  { %v1124_v42 = vadd.f32 %v1123_v10, %v1122_v30  ;;  %2448 = vmatprep.mubr.msk.f32.mxu1 %vm29_vm0, %v661_v41  ;;  %v1375_v30 = vld [vmem:[%s3676_s3 + $0x48] sm:$0xff]  ;;  %v1377_v41 = vld [vmem:[%s3676_s3 + $0x58] sm:$0xff] }
 0x811   :  { %v2617_v39 = vpack.c.bf16 %v1375_v30, %v1374_v5  ;;  %v2621_v10 = vpack.c.bf16 %v1377_v41, %v1376_v40  ;;  %v2249_v5 = vld [vmem:[%s3674_s1 + $0x7] ss:$0 sm:$0xff] }
 0x812   :  { %v1126_v28 = vadd.f32 %v1125_v33, %v1124_v42  ;;  %v1378_v33 = vld [vmem:[%s3676_s3 + $0x60] sm:$0xff]  ;;  %v1379_v42 = vld [vmem:[%s3676_s3 + $0x68] sm:$0xff] }
 0x814   :  { %2449 = vmatmul.mubr.msk.f32.vlgmr.msra.gmra.mrb[20].mxu1 %vm29_vm0, %v1126_v28  ;;  %v2625_v28 = vpack.c.bf16 %v1379_v42, %v1378_v33 }
 0x815   :  { %2604 = vmatpush3.bf16.msra.mxu1 %v2601_v31 }
 0x816   :  { %2606 = vmatprep.subr.bf16.mxu1 %v2605_v36 }
 0x819   :  { %2608 = vmatpush3.bf16.msra.mxu1 %v2605_v36 }
 0x81a   :  { %2610 = vmatprep.subr.bf16.mxu1 %v2609_v20 }
 0x81d   :  { %2612 = vmatpush3.bf16.msra.mxu1 %v2609_v20  ;;  %v2248_v20 = vld [vmem:[%s3674_s1 + $0x6] ss:$0 sm:$0xff] }
 0x81e   :  { %2614 = vmatprep.subr.bf16.mxu1 %v2613_v38 }
 0x821   :  { %2616 = vmatpush3.bf16.msra.mxu1 %v2613_v38 }
 0x822   :  { %2618 = vmatprep.subr.bf16.mxu1 %v2617_v39 }
 0x825   :  { %2620 = vmatpush3.bf16.msra.mxu1 %v2617_v39 }
 0x826   :  { %2622 = vmatprep.subr.bf16.mxu1 %v2621_v10 }
 0x829   :  { %2624 = vmatpush3.bf16.msra.mxu1 %v2621_v10  ;;  %v2250_v10 = vld [vmem:[%s3674_s1 + $0x8] ss:$0 sm:$0xff] }
 0x82a   :  { %2626 = vmatprep.subr.bf16.mxu1 %v2625_v28 }
 0x82d   :  { %2628 = vmatpush3.bf16.msra.mxu1 %v2625_v28 }
 0x8e7   :  { %v2450_v11 = vpop.f32.mrb[20].mxu1 }
 0x8e8   :  { %v1213_v35 = vadd.f32 %v2450_v11, %v2865_v9  ;;  %v1203_v1 = vpop.f32.mrb[21].mxu1  ;;  %v1380_v11 = vld [vmem:[%s3676_s3 + $0x70] sm:$0xff] }
 0x8e9   :  { %v1212_v43 = vadd.f32 %v2782_v29, %v1203_v1  ;;  %v2242_v1 = vld [vmem:[%s3674_s1 + $0x4] ss:$0 sm:$0xff] }
 0x8ea   :  { %v1220_v34 = vadd.f32 %v2239_v15, %v1213_v35 }
 0x8eb   :  { %v1219_v2 = vadd.f32 %v2239_v15, %v1212_v43  ;;  %v1381_v15 = vld [vmem:[%s3676_s3 + $0x78] sm:$0xff] }
 0x8ec   :  { %v1226_v44 = vsel %vm29_vm0, %v1220_v34, 0.0  ;;  %v2629_v35 = vpack.c.bf16 %v1381_v15, %v1380_v11 }
 0x8ed   :  { %1227 = vadd.xlane.f32.xlu0 %v1226_v44  ;;  %v1223_v7 = vsel %vm29_vm0, %v1219_v2, 0.0 }
 0x8ee   :  { %1224 = vadd.xlane.f32.xlu1 %v1223_v7  ;;  %2630 = vmatprep.subr.bf16.mxu1 %v2629_v35 }
 0x8ef   :  { %2632 = vmatpush3.bf16.msra.mxu1 %v2629_v35 }
 0x97a   :  { %v1228_v45 = vpop.xlane.xlu0 %1227 }
 0x97b   :  { %v1231_v46 = vmul.f32 0.03125, %v1228_v45  ;;  %v1225_v47 = vpop.xlane.xlu1 %1224 }
 0x97c   :  { %v1230_v8 = vmul.f32 0.03125, %v1225_v47 }
 0x97d   :  { %v1233_v48 = vsub.f32 %v1220_v34, %v1231_v46 }
 0x97e   :  { %v1232_v9 = vsub.f32 %v1219_v2, %v1230_v8 }
 0x97f   :  { %v1235_v49 = vmul.f32 %v1233_v48, %v1233_v48 }
 0x980   :  { %v1234_v50 = vmul.f32 %v1232_v9, %v1232_v9 }
 0x981   :  { %v1239_v12 = vsel %vm29_vm0, %v1235_v49, 0.0 }
 0x982   :  { %1240 = vadd.xlane.f32.xlu1 %v1239_v12  ;;  %v1236_v16 = vsel %vm29_vm0, %v1234_v50, 0.0  ;;  %v2247_v12 = vld [vmem:[%s3674_s1 + $0x5] ss:$0 sm:$0xff] }
 0x983   :  { %1237 = vadd.xlane.f32.xlu0 %v1236_v16 }
 0xa0f   :  { %v1241_v24 = vpop.xlane.xlu1 %1240 }
 0xa10   :  { %v1243_v56 = vmul.f32 0.03125, %v1241_v24  ;;  %v1238_v57 = vpop.xlane.xlu0 %1237 }
 0xa11   :  { %v1242_v25 = vmul.f32 0.03125, %v1238_v57 }
 0xa12   :  { %v1245_v58 = vadd.f32 1e-05, %v1243_v56 }
 0xa13   :  { %v1244_v59 = vadd.f32 1e-05, %v1242_v25 }
 0xa14   :  { %2734 = vrsqrt.f32 %v1245_v58 }
 0xa15   :  { %2736 = vrsqrt.f32 %v1244_v59 }
 0xa1e   :  { %v2735_v60 = vpop.eup %2734 }
 0xa1f   :  { %v2737_v61 = vpop.eup %2736  ;;  %v1249_v62 = vmul.f32 %v2735_v60, %v1233_v48 }
 0xa20   :  { %v1248_v0 = vmul.f32 %v2737_v61, %v1232_v9 }
 0xa21   :  { %v1255_v6 = vmul.f32 %v2240_v26, %v1249_v62 }
 0xa22   :  { %v1254_v17 = vmul.f32 %v2240_v26, %v1248_v0 }
 0xa23   :  { %v3396_v21 = vadd.f32 %v2241_v4, %v1255_v6  ;;  %v1505_v6 = vld [vmem:[%s3675_s2 + $0x38] sm:$0xff] }
 0xa24   :  { %v3394_v18 = vadd.f32 %v2241_v4, %v1254_v17  ;;  %v1504_v4 = vld [vmem:[%s3675_s2 + $0x8] sm:$0xff] }
 0xa25   :  { %v1506_v17 = vld [vmem:[%s3675_s2 + $0x68] sm:$0xff] }
 0xa26   :  { %2459 = vmatprep.mubr.msk.f32.mxu0 %vm29_vm0, %v3394_v18 }
 0xa27   :  { %2460 = vmatmul.mubr.msk.f32.vlgmr.msra.gmra.mrb[6].mxu0 %vm29_vm0, %v3396_v21 }
 0xafa   :  { %v2461_v29 = vpop.f32.mrb[6].mxu0 }
 0xafb   :  { %v1349_v43 = vadd.f32 %v2461_v29, %v2242_v1  ;;  %v1343_v34 = vpop.f32.mrb[7].mxu0 }
 0xafc   :  { %v1344_v2 = vadd.f32 %v2242_v1, %v1343_v34 }
 0xafd   :  { %v2246_v44 = vmul.f32 -1.442695, %v1349_v43 }
 0xafe   :  { %v2245_v7 = vmul.f32 -1.442695, %v1344_v2 }
 0xaff   :  { %2738 = vpow2.f32 %v2246_v44 }
 0xb00   :  { %2740 = vpow2.f32 %v2245_v7  ;;  %v1806_v7 = vld [vmem:[%s3675_s2 + $0x18] sm:$0xff] }
 0xb09   :  { %v2739_v45 = vpop.eup %2738 }
 0xb0a   :  { %v2741_v46 = vpop.eup %2740  ;;  %v1359_v47 = vadd.f32 1.0, %v2739_v45  ;;  %v1807_v45 = vld [vmem:[%s3675_s2 + $0x48] sm:$0xff] }
 0xb0b   :  { %v1358_v8 = vadd.f32 1.0, %v2741_v46  ;;  %v1808_v46 = vld [vmem:[%s3675_s2 + $0x78] sm:$0xff] }
 0xb0c   :  { %2742 = vrcp.f32 %v1359_v47  ;;  %v2641_v47 = vpack.c.bf16 %v1807_v45, %v1806_v7 }
 0xb0d   :  { %2744 = vrcp.f32 %v1358_v8  ;;  %v1809_v8 = vld [vmem:[%s3675_s2 + $0xa8] sm:$0xff] }
 0xb16   :  { %v2743_v48 = vpop.eup %2742 }
 0xb17   :  { %v2745_v9 = vpop.eup %2744  ;;  %v1365_v50 = vmul.f32 %v2743_v48, %v1349_v43  ;;  %v2645_v48 = vpack.c.bf16 %v1809_v8, %v1808_v46 }
 0xb18   :  { %v1364_v49 = vmul.f32 %v2745_v9, %v1344_v2  ;;  %v1625_v9 = vsub.s32 0, %v2975_v63 }
 0xb1a   :  { %2494 = vmatprep.mubr.f32.mxu1 %v1364_v49  ;;  %v1630_v49 = vsub.s32 1, %v2975_v63 }
 0xb1b   :  { %2495 = vmatmul.mubr.f32.vlgmr.msra.gmra.mrb[22].mxu1 %v1365_v50  ;;  %v1644_v50 = vsub.s32 2, %v2975_v63 }
 0xbee   :  { %v2496_v16 = vpop.f32.mrb[22].mxu1 }
 0xbef   :  { %v1459_v51 = vadd.f32 %v2496_v16, %v2247_v12  ;;  %v1453_v52 = vpop.f32.mrb[23].mxu1  ;;  %v1658_v16 = vsub.s32 3, %v2975_v63 }
 0xbf0   :  { %v1454_v53 = vadd.f32 %v2247_v12, %v1453_v52  ;;  %v1616_v12 = vld [vmem:[%s3676_s3 + $0x100] sm:$0x7f]  ;;  %v1686_v52 = vsub.s32 5, %v2975_v63 }
 0xbf1   :  { %v1463_v54 = vadd.f32 %v1459_v51, %v3396_v21  ;;  %v1507_v21 = vld [vmem:[%s3675_s2 + $0x98] sm:$0xff]  ;;  %v1672_v51 = vsub.s32 4, %v2975_v63 }
 0xbf2   :  { %v1462_v55 = vadd.f32 %v1454_v53, %v3394_v18  ;;  %v2633_v18 = vpack.c.bf16 %v1505_v6, %v1504_v4  ;;  %v2637_v13 = vpack.c.bf16 %v1507_v21, %v1506_v17 }
 0xbf3   :  { %v1469_v23 = vsel %vm29_vm0, %v1463_v54, 0.0 }
 0xbf4   :  { %1470 = vadd.xlane.f32.xlu1 %v1469_v23  ;;  %v1466_v24 = vsel %vm29_vm0, %v1462_v55, 0.0  ;;  %2634 = vmatprep.subr.bf16.mxu0 %v2633_v18 }
 0xbf5   :  { %1467 = vadd.xlane.f32.xlu0 %v1466_v24  ;;  %2636 = vmatpush3.bf16.msra.mxu0 %v2633_v18  ;;  %v3515_v24 = vrot.slane %v1616_v12, %v1625_v9 }
 0xbf6   :  { %2638 = vmatprep.subr.bf16.mxu0 %v2637_v13 }
 0xbf9   :  { %2640 = vmatpush3.bf16.msra.mxu0 %v2637_v13 }
 0xbfa   :  { %2642 = vmatprep.subr.bf16.mxu0 %v2641_v47 }
 0xc81   :  { %v1471_v56 = vpop.xlane.xlu1 %1470 }
 0xc82   :  { %v1473_v57 = vmul.f32 0.03125, %v1471_v56  ;;  %v1468_v25 = vpop.xlane.xlu0 %1467  ;;  %v1631_v56 = vrot.slane %v1616_v12, %v1630_v49 }
 0xc83   :  { %v1472_v58 = vmul.f32 0.03125, %v1468_v25 }
 0xc84   :  { %v1475_v59 = vsub.f32 %v1463_v54, %v1473_v57  ;;  %v1699_v54 = vsub.s32 6, %v2975_v63  ;;  %v1645_v57 = vrot.slane %v1616_v12, %v1644_v50 }
 0xc85   :  { %v1474_v60 = vsub.f32 %v1462_v55, %v1472_v58  ;;  %v1659_v58 = vrot.slane %v1616_v12, %v1658_v16 }
 0xc86   :  { %v1477_v26 = vmul.f32 %v1475_v59, %v1475_v59 }
 0xc87   :  { %v1476_v61 = vmul.f32 %v1474_v60, %v1474_v60 }
 0xc88   :  { %v1481_v62 = vsel %vm29_vm0, %v1477_v26, 0.0  ;;  %v3517_v26 = vrot.slane %v1616_v12, %v1686_v52 }
 0xc89   :  { %1482 = vadd.xlane.f32.xlu1 %v1481_v62  ;;  %v1478_v0 = vsel %vm29_vm0, %v1476_v61, 0.0  ;;  %v3519_v61 = vrot.slane %v1616_v12, %v1699_v54 }
 0xc8a   :  { %1479 = vadd.xlane.f32.xlu0 %v1478_v0 }
 0xd16   :  { %v1483_v22 = vpop.xlane.xlu1 %1482 }
 0xd17   :  { %v1485_v31 = vmul.f32 0.03125, %v1483_v22  ;;  %v1480_v14 = vpop.xlane.xlu0 %1479 }
 0xd18   :  { %v1484_v32 = vmul.f32 0.03125, %v1480_v14 }
 0xd19   :  { %v1487_v36 = vadd.f32 1e-05, %v1485_v31 }
 0xd1a   :  { %v1486_v19 = vadd.f32 1e-05, %v1484_v32 }
 0xd1b   :  { %2746 = vrsqrt.f32 %v1487_v36 }
 0xd1c   :  { %2748 = vrsqrt.f32 %v1486_v19 }
 0xd25   :  { %v2747_v37 = vpop.eup %2746 }
 0xd26   :  { %v2749_v3 = vpop.eup %2748  ;;  %v1491_v27 = vmul.f32 %v2747_v37, %v1475_v59  ;;  %v1673_v59 = vrot.slane %v1616_v12, %v1672_v51 }
 0xd27   :  { %v1490_v38 = vmul.f32 %v2749_v3, %v1474_v60 }
 0xd28   :  { %v1497_v30 = vmul.f32 %v2248_v20, %v1491_v27 }
 0xd29   :  { %v1496_v39 = vmul.f32 %v2248_v20, %v1490_v38 }
 0xd2a   :  { %v3482_v41 = vadd.f32 %v2249_v5, %v1497_v30 }
 0xd2b   :  { %v3480_v40 = vadd.f32 %v2249_v5, %v1496_v39 }
 0xd2d   :  { %2505 = vmatprep.mubr.msk.f32.mxu0 %vm29_vm0, %v3480_v40 }
 0xd2e   :  { %2506 = vmatmul.mubr.msk.f32.vlgmr.msra.gmra.mrb[8].mxu0 %vm29_vm0, %v3482_v41 }
 0xd2f   :  { %2644 = vmatpush3.bf16.msra.mxu0 %v2641_v47 }
 0xd30   :  { %2646 = vmatprep.subr.bf16.mxu0 %v2645_v48 }
 0xd33   :  { %2648 = vmatpush3.bf16.msra.mxu0 %v2645_v48 }
 0xe01   :  { %v2507_v33 = vpop.f32.mrb[8].mxu0 }
 0xe02   :  { %v1591_v42 = vadd.f32 %v2507_v33, %v2250_v10  ;;  %v1585_v28 = vpop.f32.mrb[9].mxu0 }
 0xe03   :  { %v1586_v11 = vadd.f32 %v2250_v10, %v1585_v28 }
 0xe04   :  { %v2254_v15 = vmul.f32 -1.442695, %v1591_v42 }
 0xe05   :  { %v2253_v35 = vmul.f32 -1.442695, %v1586_v11 }
 0xe06   :  { %2750 = vpow2.f32 %v2254_v15 }
 0xe07   :  { %2752 = vpow2.f32 %v2253_v35 }
 0xe10   :  { %v2751_v1 = vpop.eup %2750 }
 0xe11   :  { %v2753_v29 = vpop.eup %2752  ;;  %v1601_v43 = vadd.f32 1.0, %v2751_v1 }
 0xe12   :  { %v1600_v34 = vadd.f32 1.0, %v2753_v29 }
 0xe13   :  { %2754 = vrcp.f32 %v1601_v43 }
 0xe14   :  { %2756 = vrcp.f32 %v1600_v34 }
 0xe1d   :  { %v2755_v2 = vpop.eup %2754 }
 0xe1e   :  { %v2757_v44 = vpop.eup %2756  ;;  %1610 = vrot.lane.b32.xlu1 %v2755_v2, %s2808_s10 }
 0xe1f   :  { %1608 = vrot.lane.b32.xlu0 %v2757_v44, %s2808_s10 }
 0xe90   :  { %v1611_v53 = vpop.permute.xlu1 %1610 }
 0xe91   :  { %v1615_v55 = vmul.f32 %v1611_v53, %v1591_v42  ;;  %v1609_v23 = vpop.permute.xlu0 %1608 }
 0xe92   :  { %v1614_v25 = vmul.f32 %v1609_v23, %v1586_v11 }
 0xe93   :  { %v1712_v60 = vrot.slane %v1615_v55, 5 }
 0xe94   :  { %v1618_v0 = vrot.slane %v1614_v25, 5 }
 0xe95   :  { %v1714_v62 = vsel %vm1620_vm5, 0.0, %v1712_v60  ;;  %v1715_v63 = vsel %vm1620_vm5, %v1712_v60, 0.0 }
 0xe96   :  { %v1716_v4 = vmul.f32 %v1714_v62, %v3515_v24  ;;  %v1717_v6 = vmul.f32 %v1714_v62, %v1631_v56  ;;  %v1718_v17 = vmul.f32 %v1715_v63, %v1631_v56  ;;  %v1726_v18 = vmul.f32 %v1714_v62, %v1645_v57 }
 0xe97   :  { %v1727_v21 = vmul.f32 %v1715_v63, %v1645_v57  ;;  %v1735_v13 = vmul.f32 %v1714_v62, %v1659_v58  ;;  %v1736_v22 = vmul.f32 %v1715_v63, %v1659_v58  ;;  %v1744_v31 = vmul.f32 %v1714_v62, %v1673_v59 }
 0xe98   :  { %v1721_v14 = vrot.slane %v1717_v6, 1  ;;  %v1722_v32 = vrot.slane %v1718_v17, 1  ;;  %v1730_v36 = vrot.slane %v1726_v18, 2  ;;  %v1745_v19 = vmul.f32 %v1715_v63, %v1673_v59 }
 0xe99   :  { %v1731_v37 = vrot.slane %v1727_v21, 2  ;;  %v1739_v20 = vrot.slane %v1735_v13, 3  ;;  %v1740_v3 = vrot.slane %v1736_v22, 3  ;;  %v1748_v27 = vrot.slane %v1744_v31, 4 }
 0xe9a   :  { %v1723_v38 = vsel %vm1636_vm6, %v1721_v14, %v1722_v32  ;;  %v1749_v5 = vrot.slane %v1745_v19, 4  ;;  %v1753_v30 = vmul.f32 %v1714_v62, %v3517_v26  ;;  %v1754_v39 = vmul.f32 %v1715_v63, %v3517_v26  ;;  %v2256_v14 = vld [vmem:[%s3674_s1 + $0xa] ss:$0 sm:$0xff] }
 0xe9b   :  { %v1725_v10 = vadd.f32 %v1723_v38, %v1716_v4  ;;  %v1762_v33 = vmul.f32 %v1714_v62, %v3519_v61  ;;  %v1732_v42 = vsel %vm1650_vm7, %v1730_v36, %v1731_v37  ;;  %v1763_v15 = vmul.f32 %v1715_v63, %v3519_v61  ;;  %v2257_v37 = vld [vmem:[%s3674_s1 + $0xb] ss:$0 sm:$0xff] }
 0xe9c   :  { %v1757_v28 = vrot.slane %v1753_v30, 5  ;;  %v1758_v11 = vrot.slane %v1754_v39, 5  ;;  %v1741_v1 = vsel %vm1664_vm8, %v1739_v20, %v1740_v3  ;;  %v1621_v29 = vsel %vm1620_vm5, 0.0, %v1618_v0 }
 0xe9d   :  { %v1734_v35 = vadd.f32 %v1732_v42, %v1725_v10  ;;  %v1622_v43 = vsel %vm1620_vm5, %v1618_v0, 0.0  ;;  %v1750_v34 = vsel %vm1678_vm9, %v1748_v27, %v1749_v5  ;;  %v1766_v44 = vrot.slane %v1762_v33, 6 }
 0xe9e   :  { %v1759_v2 = vsel %vm1620_vm5, %v1757_v28, %v1758_v11  ;;  %v1632_v7 = vmul.f32 %v1631_v56, %v1621_v29  ;;  %v1633_v46 = vmul.f32 %v1631_v56, %v1622_v43  ;;  %v1646_v47 = vmul.f32 %v1645_v57, %v1621_v29 }
 0xe9f   :  { %v1743_v45 = vadd.f32 %v1741_v1, %v1734_v35  ;;  %v1647_v8 = vmul.f32 %v1645_v57, %v1622_v43  ;;  %v1767_v48 = vrot.slane %v1763_v15, 6  ;;  %v1660_v49 = vmul.f32 %v1659_v58, %v1621_v29 }
 0xea0   :  { %v1637_v9 = vrot.slane %v1632_v7, 1  ;;  %v1661_v50 = vmul.f32 %v1659_v58, %v1622_v43  ;;  %v1638_v16 = vrot.slane %v1633_v46, 1  ;;  %v1651_v51 = vrot.slane %v1646_v47, 2 }
 0xea1   :  { %v1752_v12 = vadd.f32 %v1750_v34, %v1743_v45  ;;  %v1652_v52 = vrot.slane %v1647_v8, 2  ;;  %v1627_v53 = vmul.f32 %v3515_v24, %v1621_v29  ;;  %v1665_v54 = vrot.slane %v1660_v49, 3  ;;  %v2262_v45 = vld [vmem:[%s3674_s1 + $0xc] ss:$0 sm:$0xff] }
 0xea2   :  { %v1674_v55 = vmul.f32 %v1673_v59, %v1621_v29  ;;  %v1675_v23 = vmul.f32 %v1673_v59, %v1622_v43  ;;  %v1639_v60 = vsel %vm1636_vm6, %v1637_v9, %v1638_v16  ;;  %v1666_v62 = vrot.slane %v1661_v50, 3  ;;  %v2255_v59 = vld [vmem:[%s3674_s1 + $0x9] ss:$0 sm:$0xff] }
 0xea3   :  { %v1761_v25 = vadd.f32 %v1759_v2, %v1752_v12  ;;  %v1688_v56 = vmul.f32 %v3517_v26, %v1621_v29  ;;  %v1768_v57 = vsel %vm1705_vm10, %v1766_v44, %v1767_v48  ;;  %v1641_v63 = vadd.f32 %v1639_v60, %v1627_v53  ;;  %v1941_v60 = vld [vmem:[%s3675_s2 + $0x58] sm:$0xff] }
 0xea4   :  { %v1653_v58 = vsel %vm1650_vm7, %v1651_v51, %v1652_v52  ;;  %v1679_v0 = vrot.slane %v1674_v55, 4  ;;  %v1680_v4 = vrot.slane %v1675_v23, 4  ;;  %v1689_v6 = vmul.f32 %v3517_v26, %v1622_v43 }
 0xea5   :  { %v1701_v24 = vmul.f32 %v3519_v61, %v1621_v29  ;;  %v1702_v17 = vmul.f32 %v3519_v61, %v1622_v43  ;;  %v1655_v18 = vadd.f32 %v1653_v58, %v1641_v63  ;;  %v1770_v21 = vadd.f32 %v1768_v57, %v1761_v25  ;;  %v1940_v25 = vld [vmem:[%s3675_s2 + $0x28] sm:$0xff]  ;;  %v1943_v57 = vld [vmem:[%s3675_s2 + $0xb8] sm:$0xff] }
 0xea6   :  { %v1667_v13 = vsel %vm1664_vm8, %v1665_v54, %v1666_v62  ;;  %v1692_v22 = vrot.slane %v1688_v56, 5  ;;  %v1693_v31 = vrot.slane %v1689_v6, 5  ;;  %v1681_v36 = vsel %vm1678_vm9, %v1679_v0, %v1680_v4  ;;  %v1942_v62 = vld [vmem:[%s3675_s2 + $0x88] sm:$0xff] }
 0xea7   :  { %v1669_v32 = vadd.f32 %v1667_v13, %v1655_v18  ;;  %v1777_v26 = vadd.f32 %v2255_v59, %v1770_v21  ;;  %v1706_v19 = vrot.slane %v1701_v24, 6  ;;  %v1707_v61 = vrot.slane %v1702_v17, 6  ;;  %v2263_v18 = vld [vmem:[%s3674_s1 + $0xd] ss:$0 sm:$0xff] }
 0xea8   :  { %v1694_v27 = vsel %vm1620_vm5, %v1692_v22, %v1693_v31  ;;  %v2649_v56 = vpack.c.bf16 %v1941_v60, %v1940_v25  ;;  %v2653_v63 = vpack.c.bf16 %v1943_v57, %v1942_v62  ;;  %v2264_v31 = vld [vmem:[%s3674_s1 + $0xe] ss:$0 sm:$0xff] }
 0xea9   :  { %v1683_v20 = vadd.f32 %v1681_v36, %v1669_v32  ;;  %v1784_v3 = vmul.f32 %v2256_v14, %v1777_v26  ;;  %v1708_v30 = vsel %vm1705_vm10, %v1706_v19, %v1707_v61  ;;  %v2044_v19 = vld [vmem:[%s3676_s3 + $0x80] sm:$0xff]  ;;  %v2045_v61 = vld [vmem:[%s3676_s3 + $0x88] sm:$0xff] }
 0xeaa   :  { %2650 = vmatprep.subr.bf16.mxu0 %v2649_v56 }
 0xeab   :  { %v1696_v38 = vadd.f32 %v1694_v27, %v1683_v20  ;;  %v1791_v5 = vadd.f32 %v2257_v37, %v1784_v3  ;;  %v2046_v20 = vld [vmem:[%s3676_s3 + $0x90] sm:$0xff]  ;;  %v2047_v3 = vld [vmem:[%s3676_s3 + $0x98] sm:$0xff] }
 0xeac   :  { %v2661_v27 = vpack.c.bf16 %v2047_v3, %v2046_v20 }
 0xead   :  { %v1710_v39 = vadd.f32 %v1708_v30, %v1696_v38  ;;  %v2259_v10 = vmul.f32 -1.442695, %v1791_v5  ;;  %v2048_v38 = vld [vmem:[%s3676_s3 + $0xa0] sm:$0xff] }
 0xeaf   :  { %v1776_v33 = vadd.f32 %v2255_v59, %v1710_v39  ;;  %2758 = vpow2.f32 %v2259_v10  ;;  %v2050_v39 = vld [vmem:[%s3676_s3 + $0xb0] sm:$0xff]  ;;  %v2051_v10 = vld [vmem:[%s3676_s3 + $0xb8] sm:$0xff] }
 0xeb1   :  { %v1783_v42 = vmul.f32 %v2256_v14, %v1776_v33  ;;  %v2669_v33 = vpack.c.bf16 %v2051_v10, %v2050_v39 }
 0xeb3   :  { %v1790_v28 = vadd.f32 %v2257_v37, %v1783_v42  ;;  %v2657_v37 = vpack.c.bf16 %v2045_v61, %v2044_v19  ;;  %v2052_v42 = vld [vmem:[%s3676_s3 + $0xc0] sm:$0xff]  ;;  %v2271_v61 = vld [vmem:[%s3674_s1 + $0x11] ss:$0 sm:$0xff] }
 0xeb5   :  { %v2258_v11 = vmul.f32 -1.442695, %v1790_v28 }
 0xeb7   :  { %2760 = vpow2.f32 %v2258_v11 }
 0xeb9   :  { %v2759_v15 = vpop.eup %2758 }
 0xeba   :  { %v1799_v35 = vadd.f32 1.0, %v2759_v15  ;;  %v2054_v15 = vld [vmem:[%s3676_s3 + $0xd0] sm:$0xff] }
 0xebc   :  { %2762 = vrcp.f32 %v1799_v35  ;;  %v2055_v35 = vld [vmem:[%s3676_s3 + $0xd8] sm:$0xff] }
 0xec1   :  { %v2761_v1 = vpop.eup %2760 }
 0xec2   :  { %v1798_v29 = vadd.f32 1.0, %v2761_v1  ;;  %v2677_v1 = vpack.c.bf16 %v2055_v35, %v2054_v15 }
 0xec4   :  { %2764 = vrcp.f32 %v1798_v29  ;;  %v2056_v29 = vld [vmem:[%s3676_s3 + $0xe0] sm:$0xff] }
 0xec6   :  { %v2763_v43 = vpop.eup %2762 }
 0xec7   :  { %v1805_v44 = vmul.f32 %v2763_v43, %v1791_v5  ;;  %v2049_v5 = vld [vmem:[%s3676_s3 + $0xa8] sm:$0xff] }
 0xec8   :  { %v2665_v30 = vpack.c.bf16 %v2049_v5, %v2048_v38  ;;  %v2057_v43 = vld [vmem:[%s3676_s3 + $0xe8] sm:$0xff] }
 0xece   :  { %v2765_v34 = vpop.eup %2764 }
 0xecf   :  { %v1804_v2 = vmul.f32 %v2765_v34, %v1790_v28  ;;  %v2053_v28 = vld [vmem:[%s3676_s3 + $0xc8] sm:$0xff]  ;;  %v2681_v34 = vpack.c.bf16 %v2057_v43, %v2056_v29 }
 0xed0   :  { %v2673_v11 = vpack.c.bf16 %v2053_v28, %v2052_v42 }
 0xed1   :  { %2516 = vmatprep.mubr.msk.f32.mxu0 %vm29_vm0, %v1804_v2  ;;  %v2058_v2 = vld [vmem:[%s3676_s3 + $0xf0] sm:$0xff] }
 0xed2   :  { %2517 = vmatmul.mubr.msk.f32.vlgmr.msra.gmra.mrb[10].mxu0 %vm29_vm0, %v1805_v44  ;;  %v2059_v44 = vld [vmem:[%s3676_s3 + $0xf8] sm:$0xff] }
 0xed3   :  { %2652 = vmatpush3.bf16.msra.mxu0 %v2649_v56 }
 0xed4   :  { %2654 = vmatprep.subr.bf16.mxu0 %v2653_v63 }
 0xed7   :  { %2656 = vmatpush3.bf16.msra.mxu0 %v2653_v63 }
 0xed8   :  { %2658 = vmatprep.subr.bf16.mxu0 %v2657_v37 }
 0xfa5   :  { %v2518_v7 = vpop.f32.mrb[10].mxu0 }
 0xfa6   :  { %v1892_v46 = vadd.f32 %v2518_v7, %v3482_v41  ;;  %v1882_v47 = vpop.f32.mrb[11].mxu0  ;;  %v2685_v7 = vpack.c.bf16 %v2059_v44, %v2058_v2 }
 0xfa7   :  { %v1891_v8 = vadd.f32 %v1882_v47, %v3480_v40 }
 0xfa8   :  { %v1899_v48 = vadd.f32 %v2262_v45, %v1892_v46 }
 0xfa9   :  { %v1898_v9 = vadd.f32 %v2262_v45, %v1891_v8  ;;  %v2265_v45 = vld [vmem:[%s3674_s1 + $0xf] ss:$0 sm:$0xff] }
 0xfaa   :  { %v1905_v49 = vsel %vm29_vm0, %v1899_v48, 0.0 }
 0xfab   :  { %1906 = vadd.xlane.f32.xlu0 %v1905_v49  ;;  %v1902_v50 = vsel %vm29_vm0, %v1898_v9, 0.0 }
 0xfac   :  { %1903 = vadd.xlane.f32.xlu1 %v1902_v50 }
0x1038   :  { %v1907_v12 = vpop.xlane.xlu0 %1906 }
0x1039   :  { %v1909_v16 = vmul.f32 0.03125, %v1907_v12  ;;  %v1904_v51 = vpop.xlane.xlu1 %1903 }
0x103a   :  { %v1908_v52 = vmul.f32 0.03125, %v1904_v51 }
0x103b   :  { %v1911_v53 = vsub.f32 %v1899_v48, %v1909_v16 }
0x103c   :  { %v1910_v54 = vsub.f32 %v1898_v9, %v1908_v52 }
0x103d   :  { %v1913_v55 = vmul.f32 %v1911_v53, %v1911_v53 }
0x103e   :  { %v1912_v23 = vmul.f32 %v1910_v54, %v1910_v54 }
0x103f   :  { %v1917_v41 = vsel %vm29_vm0, %v1913_v55, 0.0 }
0x1040   :  { %1918 = vadd.xlane.f32.xlu1 %v1917_v41  ;;  %v1914_v40 = vsel %vm29_vm0, %v1912_v23, 0.0  ;;  %v2270_v23 = vld [vmem:[%s3674_s1 + $0x10] ss:$0 sm:$0xff] }
0x1041   :  { %1915 = vadd.xlane.f32.xlu0 %v1914_v40 }
0x10cd   :  { %v1919_v58 = vpop.xlane.xlu1 %1918 }
0x10ce   :  { %v1921_v0 = vmul.f32 0.03125, %v1919_v58  ;;  %v1916_v4 = vpop.xlane.xlu0 %1915 }
0x10cf   :  { %v1920_v6 = vmul.f32 0.03125, %v1916_v4 }
0x10d0   :  { %v1923_v24 = vadd.f32 1e-05, %v1921_v0 }
0x10d1   :  { %v1922_v17 = vadd.f32 1e-05, %v1920_v6 }
0x10d2   :  { %2766 = vrsqrt.f32 %v1923_v24 }
0x10d3   :  { %2768 = vrsqrt.f32 %v1922_v17 }
0x10dc   :  { %v2767_v59 = vpop.eup %2766 }
0x10dd   :  { %v2769_v21 = vpop.eup %2768  ;;  %v1927_v13 = vmul.f32 %v2767_v59, %v1911_v53 }
0x10de   :  { %v1926_v22 = vmul.f32 %v2769_v21, %v1910_v54 }
0x10df   :  { %v1933_v14 = vmul.f32 %v2263_v18, %v1927_v13 }
0x10e0   :  { %v1932_v32 = vmul.f32 %v2263_v18, %v1926_v22 }
0x10e1   :  { %v3587_v36 = vadd.f32 %v2264_v31, %v1933_v14 }
0x10e2   :  { %v3585_v26 = vadd.f32 %v2264_v31, %v1932_v32 }
0x10e4   :  { %2527 = vmatprep.mubr.msk.f32.mxu0 %vm29_vm0, %v3585_v26 }
0x10e5   :  { %2528 = vmatmul.mubr.msk.f32.vlgmr.msra.gmra.mrb[12].mxu0 %vm29_vm0, %v3587_v36 }
0x10e6   :  { %2660 = vmatpush3.bf16.msra.mxu0 %v2657_v37 }
0x10e7   :  { %2662 = vmatprep.subr.bf16.mxu0 %v2661_v27 }
0x10ea   :  { %2664 = vmatpush3.bf16.msra.mxu0 %v2661_v27  ;;  %v2272_v27 = vld [vmem:[%s3674_s1 + $0x12] ss:$0 sm:$0xff] }
0x10eb   :  { %2666 = vmatprep.subr.bf16.mxu0 %v2665_v30 }
0x10ee   :  { %2668 = vmatpush3.bf16.msra.mxu0 %v2665_v30 }
0x10ef   :  { %2670 = vmatprep.subr.bf16.mxu0 %v2669_v33 }
0x10f2   :  { %2672 = vmatpush3.bf16.msra.mxu0 %v2669_v33 }
0x10f3   :  { %2674 = vmatprep.subr.bf16.mxu0 %v2673_v11 }
0x10f6   :  { %2676 = vmatpush3.bf16.msra.mxu0 %v2673_v11 }
0x10f7   :  { %2678 = vmatprep.subr.bf16.mxu0 %v2677_v1 }
0x10fa   :  { %2680 = vmatpush3.bf16.msra.mxu0 %v2677_v1 }
0x10fb   :  { %2682 = vmatprep.subr.bf16.mxu0 %v2681_v34 }
0x10fe   :  { %2684 = vmatpush3.bf16.msra.mxu0 %v2681_v34 }
0x10ff   :  { %2686 = vmatprep.subr.bf16.mxu0 %v2685_v7 }
0x1102   :  { %2688 = vmatpush3.bf16.msra.mxu0 %v2685_v7 }
0x11b8   :  { %v2529_v46 = vpop.f32.mrb[12].mxu0 }
0x11b9   :  { %v2027_v47 = vadd.f32 %v2529_v46, %v2265_v45  ;;  %v2021_v8 = vpop.f32.mrb[13].mxu0 }
0x11ba   :  { %v2022_v48 = vadd.f32 %v2265_v45, %v2021_v8 }
0x11bb   :  { %v2269_v9 = vmul.f32 -1.442695, %v2027_v47 }
0x11bc   :  { %v2268_v49 = vmul.f32 -1.442695, %v2022_v48 }
0x11bd   :  { %2770 = vpow2.f32 %v2269_v9 }
0x11be   :  { %2772 = vpow2.f32 %v2268_v49 }
0x11c7   :  { %v2771_v50 = vpop.eup %2770 }
0x11c8   :  { %v2773_v12 = vpop.eup %2772  ;;  %v2037_v16 = vadd.f32 1.0, %v2771_v50 }
0x11c9   :  { %v2036_v51 = vadd.f32 1.0, %v2773_v12 }
0x11ca   :  { %2774 = vrcp.f32 %v2037_v16 }
0x11cb   :  { %2776 = vrcp.f32 %v2036_v51 }
0x11d4   :  { %v2775_v52 = vpop.eup %2774 }
0x11d5   :  { %v2777_v53 = vpop.eup %2776  ;;  %v2043_v55 = vmul.f32 %v2775_v52, %v2027_v47 }
0x11d6   :  { %v2042_v54 = vmul.f32 %v2777_v53, %v2022_v48 }
0x11d8   :  { %2562 = vmatprep.mubr.f32.mxu0 %v2042_v54 }
0x11d9   :  { %2563 = vmatmul.mubr.f32.vlgmr.msra.gmra.mrb[14].mxu0 %v2043_v55 }
0x12ac   :  { %v2564_v41 = vpop.f32.mrb[14].mxu0 }
0x12ad   :  { %v2137_v40 = vadd.f32 %v2564_v41, %v2270_v23  ;;  %v2131_v25 = vpop.f32.mrb[15].mxu0 }
0x12ae   :  { %v2132_v60 = vadd.f32 %v2270_v23, %v2131_v25 }
0x12af   :  { %v2141_v62 = vadd.f32 %v2137_v40, %v3587_v36 }
0x12b0   :  { %v2140_v56 = vadd.f32 %v2132_v60, %v3585_v26 }
0x12b1   :  { %v2147_v57 = vsel %vm29_vm0, %v2141_v62, 0.0 }
0x12b2   :  { %2148 = vadd.xlane.f32.xlu1 %v2147_v57  ;;  %v2144_v63 = vsel %vm29_vm0, %v2140_v56, 0.0 }
0x12b3   :  { %2145 = vadd.xlane.f32.xlu0 %v2144_v63 }
0x133f   :  { %v2149_v58 = vpop.xlane.xlu1 %2148 }
0x1340   :  { %v2151_v0 = vmul.f32 0.03125, %v2149_v58  ;;  %v2146_v4 = vpop.xlane.xlu0 %2145 }
0x1341   :  { %v2150_v6 = vmul.f32 0.03125, %v2146_v4 }
0x1342   :  { %v2153_v24 = vsub.f32 %v2141_v62, %v2151_v0 }
0x1343   :  { %v2152_v17 = vsub.f32 %v2140_v56, %v2150_v6 }
0x1344   :  { %v2155_v59 = vmul.f32 %v2153_v24, %v2153_v24 }
0x1345   :  { %v2154_v18 = vmul.f32 %v2152_v17, %v2152_v17 }
0x1346   :  { %v2159_v21 = vsel %vm29_vm0, %v2155_v59, 0.0 }
0x1347   :  { %2160 = vadd.xlane.f32.xlu1 %v2159_v21  ;;  %v2156_v13 = vsel %vm29_vm0, %v2154_v18, 0.0 }
0x1348   :  { %2157 = vadd.xlane.f32.xlu0 %v2156_v13 }
0x13d4   :  { %v2161_v22 = vpop.xlane.xlu1 %2160 }
0x13d5   :  { %v2163_v31 = vmul.f32 0.03125, %v2161_v22  ;;  %v2158_v14 = vpop.xlane.xlu0 %2157 }
0x13d6   :  { %v2162_v32 = vmul.f32 0.03125, %v2158_v14 }
0x13d7   :  { %v2165_v26 = vadd.f32 1e-05, %v2163_v31 }
0x13d8   :  { %v2164_v36 = vadd.f32 1e-05, %v2162_v32 }
0x13d9   :  { %2778 = vrsqrt.f32 %v2165_v26 }
0x13da   :  { %2780 = vrsqrt.f32 %v2164_v36 }
0x13e3   :  { %v2779_v19 = vpop.eup %2778 }
0x13e4   :  { %v2781_v37 = vpop.eup %2780  ;;  %v2169_v20 = vmul.f32 %v2779_v19, %v2153_v24 }
0x13e5   :  { %v2168_v3 = vmul.f32 %v2781_v37, %v2152_v17 }
0x13e6   :  { %v2175_v38 = vmul.f32 %v2271_v61, %v2169_v20 }
0x13e7   :  { %v2174_v5 = vmul.f32 %v2271_v61, %v2168_v3 }
0x13e8   :  { %v2181_v30 = vadd.f32 %v2272_v27, %v2175_v38 }
0x13e9   :  { %v2180_v39 = vadd.f32 %v2272_v27, %v2174_v5 }
0x13ea   :  { %2183 = vst.msk [vmem:[#allocation2 + $0x8] sm:$0xff] %vm29_vm0, %v2181_v30 }
0x13eb   :  { %2182 = vst.msk [vmem:[#allocation2] sm:$0xff] %vm29_vm0, %v2180_v39 }
0x13ec   :  { %2794 = shalt.err (!%p2791_p4)
}
0x13ed   :  { %s2795_s0 = scalar_lea.hbm %s3677_s4, 256 }
0x13ee   :  { %p2796_p5 = scmp.ne.s32.totalorder %s3677_s4, %s2795_s0  ;;  %p2799_p6 = scmp.lt.u32.totalorder %s2795_s0, %s3677_s4 }
0x13f0   :  { %p2801_p7 = pnand %p2799_p6, %p2796_p5 }
0x13f2   :  { %2804 = shalt.err (!%p2801_p7)
}
0x13f3   :  { %s2813_s27 = smov 128   ;;  %s2814_s28 = smov 8  }
0x13f4   :  { %2195 = dma.vmem_to_hbm [thread:$0]  %s2190_s20, 256, %s3677_s4, [#allocation3], %s2813_s27, %s2813_s27, %s2814_s28  }
0x13f5   :  { %2805 = dma.done.wait [#allocation3], 256  }
0x13f6   :  { %2806 = vsyncadd [#allocation3], 4294967040 }
0x13f7   :  { %2199 = vsyncpa [#allocation3], 1 }

</bundles_post_ra>
